<compile_context>
chip_gen: v5e
topology: v5e:2x2
jax: 0.10.0
libtpu: 0.0.40
codegen_flags: <defaults>
</compile_context>

<pallas_src>
import jax
import jax.numpy as jnp
from jax.experimental import pallas as pl
from jax.experimental.pallas import tpu as pltpu

INPUT_SIZE = 16
HIDDEN_SIZE = 32
BATCH_SIZE = 2
SEQ_LEN = 8


# ----------------------------------------------------------------------------
# Single fused kernel: BiLSTM recurrence + attention + final linear.
# ----------------------------------------------------------------------------
def fused_bilstm_attn_kernel(x_ref, wih_ref, whh_ref, b_ref,
                             attw_ref, wlin_t_ref, blin_ref,
                             out_ref, m_scr):
    TB = x_ref.shape[0]            # T*B rows, time-major (t, b)
    H2 = whh_ref.shape[0]          # 2H
    H = H2 // 2
    B = attw_ref.shape[0]
    T = TB // B

    # Fused both-direction input projection, hoisted out of the recurrence.
    # Rows are time-major, so every time step is one contiguous (B, 8H) slab.
    xp = (jnp.dot(x_ref[...], wih_ref[...], preferred_element_type=jnp.float32)
          + b_ref[...])                                    # (T*B, 8H)

    whh_bd = whh_ref[...]                                  # (2H, 8H) block-diag, gate-interleaved

    # Lane mask picking the forward-direction half of each interleaved gate slab
    # ([i_f|i_b|f_f|f_b|g_f|g_b|o_f|o_b], each H lanes wide).
    lane = jax.lax.broadcasted_iota(jnp.int32, (B, 8 * H), 1)
    fwd_lane = (lane % (2 * H)) < H

    def sigmoid(v):                                        # one EUP push (vs exp + divide)
        return 0.5 * jnp.tanh(0.5 * v) + 0.5

    h_cat = None                                           # (B, 2H) = [h_f | h_b]
    c_cat = None
    # Fully unrolled recurrence; both directions share one matmul per step.
    # NOTE: DEFAULT matmul precision (bf16 MXU passes) matches the pure-JAX
    # reference's behaviour; use precision=HIGHEST here for tighter torch parity.
    for s in range(T):
        tb = T - 1 - s
        # Forward gate columns read time s, backward columns read time T-1-s.
        gx = jnp.where(fwd_lane,
                       xp[s * B:(s + 1) * B, :],
                       xp[tb * B:(tb + 1) * B, :])         # (B, 8H), off the serial chain
        if s == 0:                                         # peeled: h == c == 0
            gates = gx
        else:
            gates = gx + jnp.dot(h_cat, whh_bd,
                                 preferred_element_type=jnp.float32)
        i_g = sigmoid(gates[:, 0 * H2:1 * H2])
        g_g = jnp.tanh(gates[:, 2 * H2:3 * H2])
        o_g = sigmoid(gates[:, 3 * H2:4 * H2])
        if s == 0:
            c_cat = i_g * g_g
        else:
            f_g = sigmoid(gates[:, 1 * H2:2 * H2])
            c_cat = f_g * c_cat + i_g * g_g
        h_cat = o_g * jnp.tanh(c_cat)
        # Raw hidden states -> time-major rows of the attention matrix (no HBM).
        m_scr[s * B:(s + 1) * B, 0:H] = h_cat[:, 0:H]               # h_f at time s
        m_scr[tb * B:(tb + 1) * B, H:2 * H] = h_cat[:, H:2 * H]     # h_b at time tb

    # Attention head + final linear, all resident in VMEM.
    M = jnp.tanh(m_scr[...])                                        # (T*B, 2H)
    # scores = attentionW @ M^T, without materialising M^T.
    scores = jax.lax.dot_general(attw_ref[...], M,
                                 dimension_numbers=(((1,), (1,)), ((), ())),
                                 preferred_element_type=jnp.float32)  # (B, T*B)
    scores = scores - jnp.max(scores, axis=1, keepdims=True)          # stable softmax
    e = jnp.exp(scores)
    alpha = e / jnp.sum(e, axis=1, keepdims=True)
    rt = jnp.tanh(jnp.dot(alpha, M, preferred_element_type=jnp.float32))  # (B, 2H)
    out_ref[...] = (jnp.dot(rt, wlin_t_ref[...], preferred_element_type=jnp.float32)
                    + blin_ref[...])


# ----------------------------------------------------------------------------
# One-time parameter layout prep (outside the forward).
# ----------------------------------------------------------------------------
def _interleave_gate_cols(wf, wb):
    """Interleave per-gate column blocks of two (R, 4H) matrices into (R, 8H):
       [i_f | i_b | f_f | f_b | g_f | g_b | o_f | o_b]."""
    H = wf.shape[1] // 4
    cols = []
    for g in range(4):
        cols.append(wf[:, g * H:(g + 1) * H])
        cols.append(wb[:, g * H:(g + 1) * H])
    return jnp.concatenate(cols, axis=1)


def prepare_params(p):
    """Convert PyTorch-layout params to the kernel's fused, lane-dense layout.
    NOTE: b_f / b_b must already be the folded sum b_ih + b_hh per direction."""
    wih_f_t = p["w_ih_f"].T                  # (I, 4H)
    wih_b_t = p["w_ih_b"].T
    whh_f_t = p["w_hh_f"].T                  # (H, 4H)
    whh_b_t = p["w_hh_b"].T
    zeros_h = jnp.zeros_like(whh_f_t)
    whh_bd = jnp.concatenate(
        [_interleave_gate_cols(whh_f_t, zeros_h),      # rows for h_f
         _interleave_gate_cols(zeros_h, whh_b_t)],     # rows for h_b
        axis=0)                                        # (2H, 8H) block-diagonal
    return {
        "wih": _interleave_gate_cols(wih_f_t, wih_b_t),            # (I, 8H)
        "whh_bd": whh_bd,                                          # (2H, 8H)
        "b": _interleave_gate_cols(p["b_f"].reshape(1, -1),
                                   p["b_b"].reshape(1, -1)),       # (1, 8H)
        "attw": p["attention_w"],                                  # (B, 2H)
        "wlin_t": p["w_lin"].T,                                    # (2H, 2)
        "blin": p["b_lin"].reshape(1, -1),                         # (1, 2)
    }


# ----------------------------------------------------------------------------
# Wrapper: one gridless pallas_call; everything (~40 KB) lives in VMEM.
# ----------------------------------------------------------------------------
@jax.jit
def my_attention_bilstm_forward(x, kp):
    B, T, I = x.shape
    H2 = kp["whh_bd"].shape[0]
    # Time-major row order (t, b): each recurrence step reads a contiguous slab
    # of the hoisted input projection; attention is row-permutation invariant.
    x2d = x.swapaxes(0, 1).reshape(T * B, I)
    return pl.pallas_call(
        fused_bilstm_attn_kernel,
        out_shape=jax.ShapeDtypeStruct((B, 2), jnp.float32),
        scratch_shapes=[
            pltpu.VMEM((T * B, H2), jnp.float32),   # hidden slab -> attention M
        ],
    )(x2d, kp["wih"], kp["whh_bd"], kp["b"],
      kp["attw"], kp["wlin_t"], kp["blin"])


# ----------------------------------------------------------------------------
# Pure-JAX reference (faithful to the PyTorch module) for the sanity check.
# ----------------------------------------------------------------------------
def _lstm_ref_dir(x_bti, w_ih, w_hh, b):
    B = x_bti.shape[0]
    H = w_hh.shape[1]

    def step(carry, x_t):
        h, c = carry
        gates = x_t @ w_ih.T + h @ w_hh.T + b
        i, f, g, o = jnp.split(gates, 4, axis=1)
        i = jax.nn.sigmoid(i); f = jax.nn.sigmoid(f)
        g = jnp.tanh(g); o = jax.nn.sigmoid(o)
        c = f * c + i * g
        h = o * jnp.tanh(c)
        return (h, c), h

    x_tbi = jnp.swapaxes(x_bti, 0, 1)
    (_, _), hs = jax.lax.scan(step, (jnp.zeros((B, H)), jnp.zeros((B, H))), x_tbi)
    return jnp.swapaxes(hs, 0, 1)


def _forward_ref(x, p):
    h_f = _lstm_ref_dir(x, p["w_ih_f"], p["w_hh_f"], p["b_f"])
    h_b = jnp.flip(
        _lstm_ref_dir(jnp.flip(x, axis=1), p["w_ih_b"], p["w_hh_b"], p["b_b"]),
        axis=1)
    h = jnp.concatenate([h_f, h_b], axis=-1)
    M = jnp.tanh(h.reshape(-1, 2 * HIDDEN_SIZE))
    alpha = jax.nn.softmax(p["attention_w"] @ M.T, axis=1)
    rt = jnp.tanh(alpha @ M)
    return rt @ p["w_lin"].T + p["b_lin"]


def init_params(key):
    H, I, B = HIDDEN_SIZE, INPUT_SIZE, BATCH_SIZE
    ks = jax.random.split(key, 9)
    s = 1.0 / jnp.sqrt(H)
    return {
        "w_ih_f": jax.random.uniform(ks[0], (4 * H, I), jnp.float32, -s, s),
        "w_hh_f": jax.random.uniform(ks[1], (4 * H, H), jnp.float32, -s, s),
        "b_f":    jax.random.uniform(ks[2], (4 * H,), jnp.float32, -s, s),
        "w_ih_b": jax.random.uniform(ks[3], (4 * H, I), jnp.float32, -s, s),
        "w_hh_b": jax.random.uniform(ks[4], (4 * H, H), jnp.float32, -s, s),
        "b_b":    jax.random.uniform(ks[5], (4 * H,), jnp.float32, -s, s),
        "attention_w": jax.random.normal(ks[6], (B, 2 * H), jnp.float32),
        "w_lin": jax.random.uniform(ks[7], (2, 2 * H), jnp.float32, -s, s),
        "b_lin": jax.random.uniform(ks[8], (2,), jnp.float32, -s, s),
    }


if __name__ == "__main__":
    key = jax.random.PRNGKey(0)
    k_x, k_p = jax.random.split(key)
    x = jax.random.normal(k_x, (BATCH_SIZE, SEQ_LEN, INPUT_SIZE), jnp.float32)
    params = init_params(k_p)
    kparams = prepare_params(params)   # one-time layout prep (outside the forward)

    out = jax.block_until_ready(my_attention_bilstm_forward(x, kparams))
    assert out.shape == (BATCH_SIZE, 2), out.shape

    ref = jax.block_until_ready(_forward_ref(x, params))
    assert jnp.allclose(out, ref, rtol=1e-3, atol=1e-3), (out, ref)

    print("KERNEL_OK")
</pallas_src>

<mosaic_0001>
module attributes {stable_mosaic.version = 11 : i64} {
  func.func @fused_bilstm_attn_kernel(%arg0: memref<16x16xf32, #tpu.memory_space<vmem>>, %arg1: memref<16x256xf32, #tpu.memory_space<vmem>>, %arg2: memref<64x256xf32, #tpu.memory_space<vmem>>, %arg3: memref<1x256xf32, #tpu.memory_space<vmem>>, %arg4: memref<2x64xf32, #tpu.memory_space<vmem>>, %arg5: memref<64x2xf32, #tpu.memory_space<vmem>>, %arg6: memref<1x2xf32, #tpu.memory_space<vmem>>, %arg7: memref<2x2xf32, #tpu.memory_space<vmem>>, %arg8: memref<16x64xf32, #tpu.memory_space<vmem>>) attributes {dimension_semantics = [], scalar_prefetch = 0 : i64, scratch_operands = 1 : i64, tpu.core_type = #tpu.core_type<tc>} {
    %c0 = arith.constant 0 : index
    %c0_0 = arith.constant 0 : index
    %0 = vector.load %arg0[%c0, %c0_0] : memref<16x16xf32, #tpu.memory_space<vmem>>, vector<16x16xf32>
    %c0_1 = arith.constant 0 : index
    %c0_2 = arith.constant 0 : index
    %1 = vector.load %arg1[%c0_1, %c0_2] : memref<16x256xf32, #tpu.memory_space<vmem>>, vector<16x256xf32>
    %cst = arith.constant dense<0.000000e+00> : vector<16x256xf32>
    %2 = tpu.matmul %0, %1, %cst {dimension_numbers = #tpu.dot_dimension_numbers<[1], [0], [0], [1], [0, 0, 1, 1], [], []>} : vector<16x16xf32>, vector<16x256xf32>, vector<16x256xf32> -> vector<16x256xf32>
    %c0_3 = arith.constant 0 : index
    %c0_4 = arith.constant 0 : index
    %3 = vector.load %arg3[%c0_3, %c0_4] : memref<1x256xf32, #tpu.memory_space<vmem>>, vector<1x256xf32>
    %4 = vector.broadcast %3 : vector<1x256xf32> to vector<16x256xf32>
    %5 = arith.addf %2, %4 : vector<16x256xf32>
    %c0_5 = arith.constant 0 : index
    %c0_6 = arith.constant 0 : index
    %6 = vector.load %arg2[%c0_5, %c0_6] : memref<64x256xf32, #tpu.memory_space<vmem>>, vector<64x256xf32>
    %7 = tpu.iota {dimensions = array<i32: 1>} : vector<2x256xi32>
    %c64_i32 = arith.constant 64 : i32
    %c0_i32 = arith.constant 0 : i32
    %8 = arith.cmpi eq, %c64_i32, %c0_i32 : i32
    %c1_i32 = arith.constant 1 : i32
    %9 = arith.select %8, %c1_i32, %c64_i32 : i32
    %10 = vector.broadcast %9 : i32 to vector<2x256xi32>
    %11 = arith.remsi %7, %10 : vector<2x256xi32>
    %c0_i32_7 = arith.constant 0 : i32
    %12 = vector.broadcast %c0_i32_7 : i32 to vector<2x256xi32>
    %13 = arith.cmpi ne, %11, %12 : vector<2x256xi32>
    %c0_i32_8 = arith.constant 0 : i32
    %14 = vector.broadcast %c0_i32_8 : i32 to vector<2x256xi32>
    %15 = arith.cmpi slt, %11, %14 : vector<2x256xi32>
    %c0_i32_9 = arith.constant 0 : i32
    %16 = arith.cmpi slt, %9, %c0_i32_9 : i32
    %17 = vector.broadcast %16 : i1 to vector<2x256xi1>
    %18 = vector.broadcast %17 : vector<2x256xi1> to vector<2x256xi1>
    %19 = arith.xori %15, %18 : vector<2x256xi1>
    %20 = arith.andi %19, %13 : vector<2x256xi1>
    %21 = vector.broadcast %9 : i32 to vector<2x256xi32>
    %22 = arith.addi %11, %21 : vector<2x256xi32>
    %23 = arith.select %20, %22, %11 : vector<2x256xi1>, vector<2x256xi32>
    %c32_i32 = arith.constant 32 : i32
    %24 = vector.broadcast %c32_i32 : i32 to vector<2x256xi32>
    %25 = arith.cmpi slt, %23, %24 : vector<2x256xi32>
    %26 = vector.extract_strided_slice %5 {offsets = [0, 0], sizes = [2, 256], strides = [1, 1]} : vector<16x256xf32> to vector<2x256xf32>
    %27 = vector.extract_strided_slice %5 {offsets = [14, 0], sizes = [2, 256], strides = [1, 1]} : vector<16x256xf32> to vector<2x256xf32>
    %28 = arith.select %25, %26, %27 : vector<2x256xi1>, vector<2x256xf32>
    %29 = vector.extract_strided_slice %28 {offsets = [0, 0], sizes = [2, 64], strides = [1, 1]} : vector<2x256xf32> to vector<2x64xf32>
    %cst_10 = arith.constant 5.000000e-01 : f32
    %30 = vector.broadcast %cst_10 : f32 to vector<2x64xf32>
    %31 = arith.mulf %30, %29 : vector<2x64xf32>
    %32 = math.tanh %31 : vector<2x64xf32>
    %cst_11 = arith.constant 5.000000e-01 : f32
    %33 = vector.broadcast %cst_11 : f32 to vector<2x64xf32>
    %34 = arith.mulf %33, %32 : vector<2x64xf32>
    %cst_12 = arith.constant 5.000000e-01 : f32
    %35 = vector.broadcast %cst_12 : f32 to vector<2x64xf32>
    %36 = arith.addf %34, %35 : vector<2x64xf32>
    %37 = vector.extract_strided_slice %28 {offsets = [0, 128], sizes = [2, 64], strides = [1, 1]} : vector<2x256xf32> to vector<2x64xf32>
    %38 = math.tanh %37 : vector<2x64xf32>
    %39 = vector.extract_strided_slice %28 {offsets = [0, 192], sizes = [2, 64], strides = [1, 1]} : vector<2x256xf32> to vector<2x64xf32>
    %cst_13 = arith.constant 5.000000e-01 : f32
    %40 = vector.broadcast %cst_13 : f32 to vector<2x64xf32>
    %41 = arith.mulf %40, %39 : vector<2x64xf32>
    %42 = math.tanh %41 : vector<2x64xf32>
    %cst_14 = arith.constant 5.000000e-01 : f32
    %43 = vector.broadcast %cst_14 : f32 to vector<2x64xf32>
    %44 = arith.mulf %43, %42 : vector<2x64xf32>
    %cst_15 = arith.constant 5.000000e-01 : f32
    %45 = vector.broadcast %cst_15 : f32 to vector<2x64xf32>
    %46 = arith.addf %44, %45 : vector<2x64xf32>
    %47 = arith.mulf %36, %38 : vector<2x64xf32>
    %48 = math.tanh %47 : vector<2x64xf32>
    %49 = arith.mulf %46, %48 : vector<2x64xf32>
    %50 = vector.extract_strided_slice %49 {offsets = [0, 0], sizes = [2, 32], strides = [1, 1]} : vector<2x64xf32> to vector<2x32xf32>
    %c0_16 = arith.constant 0 : index
    %c0_17 = arith.constant 0 : index
    %51 = vector.load %arg8[%c0_16, %c0_17] : memref<16x64xf32, #tpu.memory_space<vmem>>, vector<2x32xf32>
    tpu.vector_store %arg8[%c0_16, %c0_17], %50 {strides = array<i32>} : memref<16x64xf32, #tpu.memory_space<vmem>>, vector<2x32xf32>,
    %52 = vector.extract_strided_slice %49 {offsets = [0, 32], sizes = [2, 32], strides = [1, 1]} : vector<2x64xf32> to vector<2x32xf32>
    %c14 = arith.constant 14 : index
    %c32 = arith.constant 32 : index
    %53 = vector.load %arg8[%c14, %c32] : memref<16x64xf32, #tpu.memory_space<vmem>>, vector<2x32xf32>
    tpu.vector_store %arg8[%c14, %c32], %52 {strides = array<i32>} : memref<16x64xf32, #tpu.memory_space<vmem>>, vector<2x32xf32>,
    %54 = vector.extract_strided_slice %5 {offsets = [2, 0], sizes = [2, 256], strides = [1, 1]} : vector<16x256xf32> to vector<2x256xf32>
    %55 = vector.extract_strided_slice %5 {offsets = [12, 0], sizes = [2, 256], strides = [1, 1]} : vector<16x256xf32> to vector<2x256xf32>
    %56 = arith.select %25, %54, %55 : vector<2x256xi1>, vector<2x256xf32>
    %cst_18 = arith.constant dense<0.000000e+00> : vector<2x256xf32>
    %57 = tpu.matmul %49, %6, %cst_18 {dimension_numbers = #tpu.dot_dimension_numbers<[1], [0], [0], [1], [0, 0, 1, 1], [], []>} : vector<2x64xf32>, vector<64x256xf32>, vector<2x256xf32> -> vector<2x256xf32>
    %58 = arith.addf %56, %57 : vector<2x256xf32>
    %59 = vector.extract_strided_slice %58 {offsets = [0, 0], sizes = [2, 64], strides = [1, 1]} : vector<2x256xf32> to vector<2x64xf32>
    %cst_19 = arith.constant 5.000000e-01 : f32
    %60 = vector.broadcast %cst_19 : f32 to vector<2x64xf32>
    %61 = arith.mulf %60, %59 : vector<2x64xf32>
    %62 = math.tanh %61 : vector<2x64xf32>
    %cst_20 = arith.constant 5.000000e-01 : f32
    %63 = vector.broadcast %cst_20 : f32 to vector<2x64xf32>
    %64 = arith.mulf %63, %62 : vector<2x64xf32>
    %cst_21 = arith.constant 5.000000e-01 : f32
    %65 = vector.broadcast %cst_21 : f32 to vector<2x64xf32>
    %66 = arith.addf %64, %65 : vector<2x64xf32>
    %67 = vector.extract_strided_slice %58 {offsets = [0, 128], sizes = [2, 64], strides = [1, 1]} : vector<2x256xf32> to vector<2x64xf32>
    %68 = math.tanh %67 : vector<2x64xf32>
    %69 = vector.extract_strided_slice %58 {offsets = [0, 192], sizes = [2, 64], strides = [1, 1]} : vector<2x256xf32> to vector<2x64xf32>
    %cst_22 = arith.constant 5.000000e-01 : f32
    %70 = vector.broadcast %cst_22 : f32 to vector<2x64xf32>
    %71 = arith.mulf %70, %69 : vector<2x64xf32>
    %72 = math.tanh %71 : vector<2x64xf32>
    %cst_23 = arith.constant 5.000000e-01 : f32
    %73 = vector.broadcast %cst_23 : f32 to vector<2x64xf32>
    %74 = arith.mulf %73, %72 : vector<2x64xf32>
    %cst_24 = arith.constant 5.000000e-01 : f32
    %75 = vector.broadcast %cst_24 : f32 to vector<2x64xf32>
    %76 = arith.addf %74, %75 : vector<2x64xf32>
    %77 = vector.extract_strided_slice %58 {offsets = [0, 64], sizes = [2, 64], strides = [1, 1]} : vector<2x256xf32> to vector<2x64xf32>
    %cst_25 = arith.constant 5.000000e-01 : f32
    %78 = vector.broadcast %cst_25 : f32 to vector<2x64xf32>
    %79 = arith.mulf %78, %77 : vector<2x64xf32>
    %80 = math.tanh %79 : vector<2x64xf32>
    %cst_26 = arith.constant 5.000000e-01 : f32
    %81 = vector.broadcast %cst_26 : f32 to vector<2x64xf32>
    %82 = arith.mulf %81, %80 : vector<2x64xf32>
    %cst_27 = arith.constant 5.000000e-01 : f32
    %83 = vector.broadcast %cst_27 : f32 to vector<2x64xf32>
    %84 = arith.addf %82, %83 : vector<2x64xf32>
    %85 = arith.mulf %84, %47 : vector<2x64xf32>
    %86 = arith.mulf %66, %68 : vector<2x64xf32>
    %87 = arith.addf %85, %86 : vector<2x64xf32>
    %88 = math.tanh %87 : vector<2x64xf32>
    %89 = arith.mulf %76, %88 : vector<2x64xf32>
    %90 = vector.extract_strided_slice %89 {offsets = [0, 0], sizes = [2, 32], strides = [1, 1]} : vector<2x64xf32> to vector<2x32xf32>
    %c2 = arith.constant 2 : index
    %c0_28 = arith.constant 0 : index
    %91 = vector.load %arg8[%c2, %c0_28] : memref<16x64xf32, #tpu.memory_space<vmem>>, vector<2x32xf32>
    tpu.vector_store %arg8[%c2, %c0_28], %90 {strides = array<i32>} : memref<16x64xf32, #tpu.memory_space<vmem>>, vector<2x32xf32>,
    %92 = vector.extract_strided_slice %89 {offsets = [0, 32], sizes = [2, 32], strides = [1, 1]} : vector<2x64xf32> to vector<2x32xf32>
    %c12 = arith.constant 12 : index
    %c32_29 = arith.constant 32 : index
    %93 = vector.load %arg8[%c12, %c32_29] : memref<16x64xf32, #tpu.memory_space<vmem>>, vector<2x32xf32>
    tpu.vector_store %arg8[%c12, %c32_29], %92 {strides = array<i32>} : memref<16x64xf32, #tpu.memory_space<vmem>>, vector<2x32xf32>,
    %94 = vector.extract_strided_slice %5 {offsets = [4, 0], sizes = [2, 256], strides = [1, 1]} : vector<16x256xf32> to vector<2x256xf32>
    %95 = vector.extract_strided_slice %5 {offsets = [10, 0], sizes = [2, 256], strides = [1, 1]} : vector<16x256xf32> to vector<2x256xf32>
    %96 = arith.select %25, %94, %95 : vector<2x256xi1>, vector<2x256xf32>
    %cst_30 = arith.constant dense<0.000000e+00> : vector<2x256xf32>
    %97 = tpu.matmul %89, %6, %cst_30 {dimension_numbers = #tpu.dot_dimension_numbers<[1], [0], [0], [1], [0, 0, 1, 1], [], []>} : vector<2x64xf32>, vector<64x256xf32>, vector<2x256xf32> -> vector<2x256xf32>
    %98 = arith.addf %96, %97 : vector<2x256xf32>
    %99 = vector.extract_strided_slice %98 {offsets = [0, 0], sizes = [2, 64], strides = [1, 1]} : vector<2x256xf32> to vector<2x64xf32>
    %cst_31 = arith.constant 5.000000e-01 : f32
    %100 = vector.broadcast %cst_31 : f32 to vector<2x64xf32>
    %101 = arith.mulf %100, %99 : vector<2x64xf32>
    %102 = math.tanh %101 : vector<2x64xf32>
    %cst_32 = arith.constant 5.000000e-01 : f32
    %103 = vector.broadcast %cst_32 : f32 to vector<2x64xf32>
    %104 = arith.mulf %103, %102 : vector<2x64xf32>
    %cst_33 = arith.constant 5.000000e-01 : f32
    %105 = vector.broadcast %cst_33 : f32 to vector<2x64xf32>
    %106 = arith.addf %104, %105 : vector<2x64xf32>
    %107 = vector.extract_strided_slice %98 {offsets = [0, 128], sizes = [2, 64], strides = [1, 1]} : vector<2x256xf32> to vector<2x64xf32>
    %108 = math.tanh %107 : vector<2x64xf32>
    %109 = vector.extract_strided_slice %98 {offsets = [0, 192], sizes = [2, 64], strides = [1, 1]} : vector<2x256xf32> to vector<2x64xf32>
    %cst_34 = arith.constant 5.000000e-01 : f32
    %110 = vector.broadcast %cst_34 : f32 to vector<2x64xf32>
    %111 = arith.mulf %110, %109 : vector<2x64xf32>
    %112 = math.tanh %111 : vector<2x64xf32>
    %cst_35 = arith.constant 5.000000e-01 : f32
    %113 = vector.broadcast %cst_35 : f32 to vector<2x64xf32>
    %114 = arith.mulf %113, %112 : vector<2x64xf32>
    %cst_36 = arith.constant 5.000000e-01 : f32
    %115 = vector.broadcast %cst_36 : f32 to vector<2x64xf32>
    %116 = arith.addf %114, %115 : vector<2x64xf32>
    %117 = vector.extract_strided_slice %98 {offsets = [0, 64], sizes = [2, 64], strides = [1, 1]} : vector<2x256xf32> to vector<2x64xf32>
    %cst_37 = arith.constant 5.000000e-01 : f32
    %118 = vector.broadcast %cst_37 : f32 to vector<2x64xf32>
    %119 = arith.mulf %118, %117 : vector<2x64xf32>
    %120 = math.tanh %119 : vector<2x64xf32>
    %cst_38 = arith.constant 5.000000e-01 : f32
    %121 = vector.broadcast %cst_38 : f32 to vector<2x64xf32>
    %122 = arith.mulf %121, %120 : vector<2x64xf32>
    %cst_39 = arith.constant 5.000000e-01 : f32
    %123 = vector.broadcast %cst_39 : f32 to vector<2x64xf32>
    %124 = arith.addf %122, %123 : vector<2x64xf32>
    %125 = arith.mulf %124, %87 : vector<2x64xf32>
    %126 = arith.mulf %106, %108 : vector<2x64xf32>
    %127 = arith.addf %125, %126 : vector<2x64xf32>
    %128 = math.tanh %127 : vector<2x64xf32>
    %129 = arith.mulf %116, %128 : vector<2x64xf32>
    %130 = vector.extract_strided_slice %129 {offsets = [0, 0], sizes = [2, 32], strides = [1, 1]} : vector<2x64xf32> to vector<2x32xf32>
    %c4 = arith.constant 4 : index
    %c0_40 = arith.constant 0 : index
    %131 = vector.load %arg8[%c4, %c0_40] : memref<16x64xf32, #tpu.memory_space<vmem>>, vector<2x32xf32>
    tpu.vector_store %arg8[%c4, %c0_40], %130 {strides = array<i32>} : memref<16x64xf32, #tpu.memory_space<vmem>>, vector<2x32xf32>,
    %132 = vector.extract_strided_slice %129 {offsets = [0, 32], sizes = [2, 32], strides = [1, 1]} : vector<2x64xf32> to vector<2x32xf32>
    %c10 = arith.constant 10 : index
    %c32_41 = arith.constant 32 : index
    %133 = vector.load %arg8[%c10, %c32_41] : memref<16x64xf32, #tpu.memory_space<vmem>>, vector<2x32xf32>
    tpu.vector_store %arg8[%c10, %c32_41], %132 {strides = array<i32>} : memref<16x64xf32, #tpu.memory_space<vmem>>, vector<2x32xf32>,
    %134 = vector.extract_strided_slice %5 {offsets = [6, 0], sizes = [2, 256], strides = [1, 1]} : vector<16x256xf32> to vector<2x256xf32>
    %135 = vector.extract_strided_slice %5 {offsets = [8, 0], sizes = [2, 256], strides = [1, 1]} : vector<16x256xf32> to vector<2x256xf32>
    %136 = arith.select %25, %134, %135 : vector<2x256xi1>, vector<2x256xf32>
    %cst_42 = arith.constant dense<0.000000e+00> : vector<2x256xf32>
    %137 = tpu.matmul %129, %6, %cst_42 {dimension_numbers = #tpu.dot_dimension_numbers<[1], [0], [0], [1], [0, 0, 1, 1], [], []>} : vector<2x64xf32>, vector<64x256xf32>, vector<2x256xf32> -> vector<2x256xf32>
    %138 = arith.addf %136, %137 : vector<2x256xf32>
    %139 = vector.extract_strided_slice %138 {offsets = [0, 0], sizes = [2, 64], strides = [1, 1]} : vector<2x256xf32> to vector<2x64xf32>
    %cst_43 = arith.constant 5.000000e-01 : f32
    %140 = vector.broadcast %cst_43 : f32 to vector<2x64xf32>
    %141 = arith.mulf %140, %139 : vector<2x64xf32>
    %142 = math.tanh %141 : vector<2x64xf32>
    %cst_44 = arith.constant 5.000000e-01 : f32
    %143 = vector.broadcast %cst_44 : f32 to vector<2x64xf32>
    %144 = arith.mulf %143, %142 : vector<2x64xf32>
    %cst_45 = arith.constant 5.000000e-01 : f32
    %145 = vector.broadcast %cst_45 : f32 to vector<2x64xf32>
    %146 = arith.addf %144, %145 : vector<2x64xf32>
    %147 = vector.extract_strided_slice %138 {offsets = [0, 128], sizes = [2, 64], strides = [1, 1]} : vector<2x256xf32> to vector<2x64xf32>
    %148 = math.tanh %147 : vector<2x64xf32>
    %149 = vector.extract_strided_slice %138 {offsets = [0, 192], sizes = [2, 64], strides = [1, 1]} : vector<2x256xf32> to vector<2x64xf32>
    %cst_46 = arith.constant 5.000000e-01 : f32
    %150 = vector.broadcast %cst_46 : f32 to vector<2x64xf32>
    %151 = arith.mulf %150, %149 : vector<2x64xf32>
    %152 = math.tanh %151 : vector<2x64xf32>
    %cst_47 = arith.constant 5.000000e-01 : f32
    %153 = vector.broadcast %cst_47 : f32 to vector<2x64xf32>
    %154 = arith.mulf %153, %152 : vector<2x64xf32>
    %cst_48 = arith.constant 5.000000e-01 : f32
    %155 = vector.broadcast %cst_48 : f32 to vector<2x64xf32>
    %156 = arith.addf %154, %155 : vector<2x64xf32>
    %157 = vector.extract_strided_slice %138 {offsets = [0, 64], sizes = [2, 64], strides = [1, 1]} : vector<2x256xf32> to vector<2x64xf32>
    %cst_49 = arith.constant 5.000000e-01 : f32
    %158 = vector.broadcast %cst_49 : f32 to vector<2x64xf32>
    %159 = arith.mulf %158, %157 : vector<2x64xf32>
    %160 = math.tanh %159 : vector<2x64xf32>
    %cst_50 = arith.constant 5.000000e-01 : f32
    %161 = vector.broadcast %cst_50 : f32 to vector<2x64xf32>
    %162 = arith.mulf %161, %160 : vector<2x64xf32>
    %cst_51 = arith.constant 5.000000e-01 : f32
    %163 = vector.broadcast %cst_51 : f32 to vector<2x64xf32>
    %164 = arith.addf %162, %163 : vector<2x64xf32>
    %165 = arith.mulf %164, %127 : vector<2x64xf32>
    %166 = arith.mulf %146, %148 : vector<2x64xf32>
    %167 = arith.addf %165, %166 : vector<2x64xf32>
    %168 = math.tanh %167 : vector<2x64xf32>
    %169 = arith.mulf %156, %168 : vector<2x64xf32>
    %170 = vector.extract_strided_slice %169 {offsets = [0, 0], sizes = [2, 32], strides = [1, 1]} : vector<2x64xf32> to vector<2x32xf32>
    %c6 = arith.constant 6 : index
    %c0_52 = arith.constant 0 : index
    %171 = vector.load %arg8[%c6, %c0_52] : memref<16x64xf32, #tpu.memory_space<vmem>>, vector<2x32xf32>
    tpu.vector_store %arg8[%c6, %c0_52], %170 {strides = array<i32>} : memref<16x64xf32, #tpu.memory_space<vmem>>, vector<2x32xf32>,
    %172 = vector.extract_strided_slice %169 {offsets = [0, 32], sizes = [2, 32], strides = [1, 1]} : vector<2x64xf32> to vector<2x32xf32>
    %c8 = arith.constant 8 : index
    %c32_53 = arith.constant 32 : index
    %173 = vector.load %arg8[%c8, %c32_53] : memref<16x64xf32, #tpu.memory_space<vmem>>, vector<2x32xf32>
    tpu.vector_store %arg8[%c8, %c32_53], %172 {strides = array<i32>} : memref<16x64xf32, #tpu.memory_space<vmem>>, vector<2x32xf32>,
    %174 = vector.extract_strided_slice %5 {offsets = [8, 0], sizes = [2, 256], strides = [1, 1]} : vector<16x256xf32> to vector<2x256xf32>
    %175 = vector.extract_strided_slice %5 {offsets = [6, 0], sizes = [2, 256], strides = [1, 1]} : vector<16x256xf32> to vector<2x256xf32>
    %176 = arith.select %25, %174, %175 : vector<2x256xi1>, vector<2x256xf32>
    %cst_54 = arith.constant dense<0.000000e+00> : vector<2x256xf32>
    %177 = tpu.matmul %169, %6, %cst_54 {dimension_numbers = #tpu.dot_dimension_numbers<[1], [0], [0], [1], [0, 0, 1, 1], [], []>} : vector<2x64xf32>, vector<64x256xf32>, vector<2x256xf32> -> vector<2x256xf32>
    %178 = arith.addf %176, %177 : vector<2x256xf32>
    %179 = vector.extract_strided_slice %178 {offsets = [0, 0], sizes = [2, 64], strides = [1, 1]} : vector<2x256xf32> to vector<2x64xf32>
    %cst_55 = arith.constant 5.000000e-01 : f32
    %180 = vector.broadcast %cst_55 : f32 to vector<2x64xf32>
    %181 = arith.mulf %180, %179 : vector<2x64xf32>
    %182 = math.tanh %181 : vector<2x64xf32>
    %cst_56 = arith.constant 5.000000e-01 : f32
    %183 = vector.broadcast %cst_56 : f32 to vector<2x64xf32>
    %184 = arith.mulf %183, %182 : vector<2x64xf32>
    %cst_57 = arith.constant 5.000000e-01 : f32
    %185 = vector.broadcast %cst_57 : f32 to vector<2x64xf32>
    %186 = arith.addf %184, %185 : vector<2x64xf32>
    %187 = vector.extract_strided_slice %178 {offsets = [0, 128], sizes = [2, 64], strides = [1, 1]} : vector<2x256xf32> to vector<2x64xf32>
    %188 = math.tanh %187 : vector<2x64xf32>
    %189 = vector.extract_strided_slice %178 {offsets = [0, 192], sizes = [2, 64], strides = [1, 1]} : vector<2x256xf32> to vector<2x64xf32>
    %cst_58 = arith.constant 5.000000e-01 : f32
    %190 = vector.broadcast %cst_58 : f32 to vector<2x64xf32>
    %191 = arith.mulf %190, %189 : vector<2x64xf32>
    %192 = math.tanh %191 : vector<2x64xf32>
    %cst_59 = arith.constant 5.000000e-01 : f32
    %193 = vector.broadcast %cst_59 : f32 to vector<2x64xf32>
    %194 = arith.mulf %193, %192 : vector<2x64xf32>
    %cst_60 = arith.constant 5.000000e-01 : f32
    %195 = vector.broadcast %cst_60 : f32 to vector<2x64xf32>
    %196 = arith.addf %194, %195 : vector<2x64xf32>
    %197 = vector.extract_strided_slice %178 {offsets = [0, 64], sizes = [2, 64], strides = [1, 1]} : vector<2x256xf32> to vector<2x64xf32>
    %cst_61 = arith.constant 5.000000e-01 : f32
    %198 = vector.broadcast %cst_61 : f32 to vector<2x64xf32>
    %199 = arith.mulf %198, %197 : vector<2x64xf32>
    %200 = math.tanh %199 : vector<2x64xf32>
    %cst_62 = arith.constant 5.000000e-01 : f32
    %201 = vector.broadcast %cst_62 : f32 to vector<2x64xf32>
    %202 = arith.mulf %201, %200 : vector<2x64xf32>
    %cst_63 = arith.constant 5.000000e-01 : f32
    %203 = vector.broadcast %cst_63 : f32 to vector<2x64xf32>
    %204 = arith.addf %202, %203 : vector<2x64xf32>
    %205 = arith.mulf %204, %167 : vector<2x64xf32>
    %206 = arith.mulf %186, %188 : vector<2x64xf32>
    %207 = arith.addf %205, %206 : vector<2x64xf32>
    %208 = math.tanh %207 : vector<2x64xf32>
    %209 = arith.mulf %196, %208 : vector<2x64xf32>
    %210 = vector.extract_strided_slice %209 {offsets = [0, 0], sizes = [2, 32], strides = [1, 1]} : vector<2x64xf32> to vector<2x32xf32>
    %c8_64 = arith.constant 8 : index
    %c0_65 = arith.constant 0 : index
    %211 = vector.load %arg8[%c8_64, %c0_65] : memref<16x64xf32, #tpu.memory_space<vmem>>, vector<2x32xf32>
    tpu.vector_store %arg8[%c8_64, %c0_65], %210 {strides = array<i32>} : memref<16x64xf32, #tpu.memory_space<vmem>>, vector<2x32xf32>,
    %212 = vector.extract_strided_slice %209 {offsets = [0, 32], sizes = [2, 32], strides = [1, 1]} : vector<2x64xf32> to vector<2x32xf32>
    %c6_66 = arith.constant 6 : index
    %c32_67 = arith.constant 32 : index
    %213 = vector.load %arg8[%c6_66, %c32_67] : memref<16x64xf32, #tpu.memory_space<vmem>>, vector<2x32xf32>
    tpu.vector_store %arg8[%c6_66, %c32_67], %212 {strides = array<i32>} : memref<16x64xf32, #tpu.memory_space<vmem>>, vector<2x32xf32>,
    %214 = vector.extract_strided_slice %5 {offsets = [10, 0], sizes = [2, 256], strides = [1, 1]} : vector<16x256xf32> to vector<2x256xf32>
    %215 = vector.extract_strided_slice %5 {offsets = [4, 0], sizes = [2, 256], strides = [1, 1]} : vector<16x256xf32> to vector<2x256xf32>
    %216 = arith.select %25, %214, %215 : vector<2x256xi1>, vector<2x256xf32>
    %cst_68 = arith.constant dense<0.000000e+00> : vector<2x256xf32>
    %217 = tpu.matmul %209, %6, %cst_68 {dimension_numbers = #tpu.dot_dimension_numbers<[1], [0], [0], [1], [0, 0, 1, 1], [], []>} : vector<2x64xf32>, vector<64x256xf32>, vector<2x256xf32> -> vector<2x256xf32>
    %218 = arith.addf %216, %217 : vector<2x256xf32>
    %219 = vector.extract_strided_slice %218 {offsets = [0, 0], sizes = [2, 64], strides = [1, 1]} : vector<2x256xf32> to vector<2x64xf32>
    %cst_69 = arith.constant 5.000000e-01 : f32
    %220 = vector.broadcast %cst_69 : f32 to vector<2x64xf32>
    %221 = arith.mulf %220, %219 : vector<2x64xf32>
    %222 = math.tanh %221 : vector<2x64xf32>
    %cst_70 = arith.constant 5.000000e-01 : f32
    %223 = vector.broadcast %cst_70 : f32 to vector<2x64xf32>
    %224 = arith.mulf %223, %222 : vector<2x64xf32>
    %cst_71 = arith.constant 5.000000e-01 : f32
    %225 = vector.broadcast %cst_71 : f32 to vector<2x64xf32>
    %226 = arith.addf %224, %225 : vector<2x64xf32>
    %227 = vector.extract_strided_slice %218 {offsets = [0, 128], sizes = [2, 64], strides = [1, 1]} : vector<2x256xf32> to vector<2x64xf32>
    %228 = math.tanh %227 : vector<2x64xf32>
    %229 = vector.extract_strided_slice %218 {offsets = [0, 192], sizes = [2, 64], strides = [1, 1]} : vector<2x256xf32> to vector<2x64xf32>
    %cst_72 = arith.constant 5.000000e-01 : f32
    %230 = vector.broadcast %cst_72 : f32 to vector<2x64xf32>
    %231 = arith.mulf %230, %229 : vector<2x64xf32>
    %232 = math.tanh %231 : vector<2x64xf32>
    %cst_73 = arith.constant 5.000000e-01 : f32
    %233 = vector.broadcast %cst_73 : f32 to vector<2x64xf32>
    %234 = arith.mulf %233, %232 : vector<2x64xf32>
    %cst_74 = arith.constant 5.000000e-01 : f32
    %235 = vector.broadcast %cst_74 : f32 to vector<2x64xf32>
    %236 = arith.addf %234, %235 : vector<2x64xf32>
    %237 = vector.extract_strided_slice %218 {offsets = [0, 64], sizes = [2, 64], strides = [1, 1]} : vector<2x256xf32> to vector<2x64xf32>
    %cst_75 = arith.constant 5.000000e-01 : f32
    %238 = vector.broadcast %cst_75 : f32 to vector<2x64xf32>
    %239 = arith.mulf %238, %237 : vector<2x64xf32>
    %240 = math.tanh %239 : vector<2x64xf32>
    %cst_76 = arith.constant 5.000000e-01 : f32
    %241 = vector.broadcast %cst_76 : f32 to vector<2x64xf32>
    %242 = arith.mulf %241, %240 : vector<2x64xf32>
    %cst_77 = arith.constant 5.000000e-01 : f32
    %243 = vector.broadcast %cst_77 : f32 to vector<2x64xf32>
    %244 = arith.addf %242, %243 : vector<2x64xf32>
    %245 = arith.mulf %244, %207 : vector<2x64xf32>
    %246 = arith.mulf %226, %228 : vector<2x64xf32>
    %247 = arith.addf %245, %246 : vector<2x64xf32>
    %248 = math.tanh %247 : vector<2x64xf32>
    %249 = arith.mulf %236, %248 : vector<2x64xf32>
    %250 = vector.extract_strided_slice %249 {offsets = [0, 0], sizes = [2, 32], strides = [1, 1]} : vector<2x64xf32> to vector<2x32xf32>
    %c10_78 = arith.constant 10 : index
    %c0_79 = arith.constant 0 : index
    %251 = vector.load %arg8[%c10_78, %c0_79] : memref<16x64xf32, #tpu.memory_space<vmem>>, vector<2x32xf32>
    tpu.vector_store %arg8[%c10_78, %c0_79], %250 {strides = array<i32>} : memref<16x64xf32, #tpu.memory_space<vmem>>, vector<2x32xf32>,
    %252 = vector.extract_strided_slice %249 {offsets = [0, 32], sizes = [2, 32], strides = [1, 1]} : vector<2x64xf32> to vector<2x32xf32>
    %c4_80 = arith.constant 4 : index
    %c32_81 = arith.constant 32 : index
    %253 = vector.load %arg8[%c4_80, %c32_81] : memref<16x64xf32, #tpu.memory_space<vmem>>, vector<2x32xf32>
    tpu.vector_store %arg8[%c4_80, %c32_81], %252 {strides = array<i32>} : memref<16x64xf32, #tpu.memory_space<vmem>>, vector<2x32xf32>,
    %254 = vector.extract_strided_slice %5 {offsets = [12, 0], sizes = [2, 256], strides = [1, 1]} : vector<16x256xf32> to vector<2x256xf32>
    %255 = vector.extract_strided_slice %5 {offsets = [2, 0], sizes = [2, 256], strides = [1, 1]} : vector<16x256xf32> to vector<2x256xf32>
    %256 = arith.select %25, %254, %255 : vector<2x256xi1>, vector<2x256xf32>
    %cst_82 = arith.constant dense<0.000000e+00> : vector<2x256xf32>
    %257 = tpu.matmul %249, %6, %cst_82 {dimension_numbers = #tpu.dot_dimension_numbers<[1], [0], [0], [1], [0, 0, 1, 1], [], []>} : vector<2x64xf32>, vector<64x256xf32>, vector<2x256xf32> -> vector<2x256xf32>
    %258 = arith.addf %256, %257 : vector<2x256xf32>
    %259 = vector.extract_strided_slice %258 {offsets = [0, 0], sizes = [2, 64], strides = [1, 1]} : vector<2x256xf32> to vector<2x64xf32>
    %cst_83 = arith.constant 5.000000e-01 : f32
    %260 = vector.broadcast %cst_83 : f32 to vector<2x64xf32>
    %261 = arith.mulf %260, %259 : vector<2x64xf32>
    %262 = math.tanh %261 : vector<2x64xf32>
    %cst_84 = arith.constant 5.000000e-01 : f32
    %263 = vector.broadcast %cst_84 : f32 to vector<2x64xf32>
    %264 = arith.mulf %263, %262 : vector<2x64xf32>
    %cst_85 = arith.constant 5.000000e-01 : f32
    %265 = vector.broadcast %cst_85 : f32 to vector<2x64xf32>
    %266 = arith.addf %264, %265 : vector<2x64xf32>
    %267 = vector.extract_strided_slice %258 {offsets = [0, 128], sizes = [2, 64], strides = [1, 1]} : vector<2x256xf32> to vector<2x64xf32>
    %268 = math.tanh %267 : vector<2x64xf32>
    %269 = vector.extract_strided_slice %258 {offsets = [0, 192], sizes = [2, 64], strides = [1, 1]} : vector<2x256xf32> to vector<2x64xf32>
    %cst_86 = arith.constant 5.000000e-01 : f32
    %270 = vector.broadcast %cst_86 : f32 to vector<2x64xf32>
    %271 = arith.mulf %270, %269 : vector<2x64xf32>
    %272 = math.tanh %271 : vector<2x64xf32>
    %cst_87 = arith.constant 5.000000e-01 : f32
    %273 = vector.broadcast %cst_87 : f32 to vector<2x64xf32>
    %274 = arith.mulf %273, %272 : vector<2x64xf32>
    %cst_88 = arith.constant 5.000000e-01 : f32
    %275 = vector.broadcast %cst_88 : f32 to vector<2x64xf32>
    %276 = arith.addf %274, %275 : vector<2x64xf32>
    %277 = vector.extract_strided_slice %258 {offsets = [0, 64], sizes = [2, 64], strides = [1, 1]} : vector<2x256xf32> to vector<2x64xf32>
    %cst_89 = arith.constant 5.000000e-01 : f32
    %278 = vector.broadcast %cst_89 : f32 to vector<2x64xf32>
    %279 = arith.mulf %278, %277 : vector<2x64xf32>
    %280 = math.tanh %279 : vector<2x64xf32>
    %cst_90 = arith.constant 5.000000e-01 : f32
    %281 = vector.broadcast %cst_90 : f32 to vector<2x64xf32>
    %282 = arith.mulf %281, %280 : vector<2x64xf32>
    %cst_91 = arith.constant 5.000000e-01 : f32
    %283 = vector.broadcast %cst_91 : f32 to vector<2x64xf32>
    %284 = arith.addf %282, %283 : vector<2x64xf32>
    %285 = arith.mulf %284, %247 : vector<2x64xf32>
    %286 = arith.mulf %266, %268 : vector<2x64xf32>
    %287 = arith.addf %285, %286 : vector<2x64xf32>
    %288 = math.tanh %287 : vector<2x64xf32>
    %289 = arith.mulf %276, %288 : vector<2x64xf32>
    %290 = vector.extract_strided_slice %289 {offsets = [0, 0], sizes = [2, 32], strides = [1, 1]} : vector<2x64xf32> to vector<2x32xf32>
    %c12_92 = arith.constant 12 : index
    %c0_93 = arith.constant 0 : index
    %291 = vector.load %arg8[%c12_92, %c0_93] : memref<16x64xf32, #tpu.memory_space<vmem>>, vector<2x32xf32>
    tpu.vector_store %arg8[%c12_92, %c0_93], %290 {strides = array<i32>} : memref<16x64xf32, #tpu.memory_space<vmem>>, vector<2x32xf32>,
    %292 = vector.extract_strided_slice %289 {offsets = [0, 32], sizes = [2, 32], strides = [1, 1]} : vector<2x64xf32> to vector<2x32xf32>
    %c2_94 = arith.constant 2 : index
    %c32_95 = arith.constant 32 : index
    %293 = vector.load %arg8[%c2_94, %c32_95] : memref<16x64xf32, #tpu.memory_space<vmem>>, vector<2x32xf32>
    tpu.vector_store %arg8[%c2_94, %c32_95], %292 {strides = array<i32>} : memref<16x64xf32, #tpu.memory_space<vmem>>, vector<2x32xf32>,
    %294 = vector.extract_strided_slice %5 {offsets = [14, 0], sizes = [2, 256], strides = [1, 1]} : vector<16x256xf32> to vector<2x256xf32>
    %295 = vector.extract_strided_slice %5 {offsets = [0, 0], sizes = [2, 256], strides = [1, 1]} : vector<16x256xf32> to vector<2x256xf32>
    %296 = arith.select %25, %294, %295 : vector<2x256xi1>, vector<2x256xf32>
    %cst_96 = arith.constant dense<0.000000e+00> : vector<2x256xf32>
    %297 = tpu.matmul %289, %6, %cst_96 {dimension_numbers = #tpu.dot_dimension_numbers<[1], [0], [0], [1], [0, 0, 1, 1], [], []>} : vector<2x64xf32>, vector<64x256xf32>, vector<2x256xf32> -> vector<2x256xf32>
    %298 = arith.addf %296, %297 : vector<2x256xf32>
    %299 = vector.extract_strided_slice %298 {offsets = [0, 0], sizes = [2, 64], strides = [1, 1]} : vector<2x256xf32> to vector<2x64xf32>
    %cst_97 = arith.constant 5.000000e-01 : f32
    %300 = vector.broadcast %cst_97 : f32 to vector<2x64xf32>
    %301 = arith.mulf %300, %299 : vector<2x64xf32>
    %302 = math.tanh %301 : vector<2x64xf32>
    %cst_98 = arith.constant 5.000000e-01 : f32
    %303 = vector.broadcast %cst_98 : f32 to vector<2x64xf32>
    %304 = arith.mulf %303, %302 : vector<2x64xf32>
    %cst_99 = arith.constant 5.000000e-01 : f32
    %305 = vector.broadcast %cst_99 : f32 to vector<2x64xf32>
    %306 = arith.addf %304, %305 : vector<2x64xf32>
    %307 = vector.extract_strided_slice %298 {offsets = [0, 128], sizes = [2, 64], strides = [1, 1]} : vector<2x256xf32> to vector<2x64xf32>
    %308 = math.tanh %307 : vector<2x64xf32>
    %309 = vector.extract_strided_slice %298 {offsets = [0, 192], sizes = [2, 64], strides = [1, 1]} : vector<2x256xf32> to vector<2x64xf32>
    %cst_100 = arith.constant 5.000000e-01 : f32
    %310 = vector.broadcast %cst_100 : f32 to vector<2x64xf32>
    %311 = arith.mulf %310, %309 : vector<2x64xf32>
    %312 = math.tanh %311 : vector<2x64xf32>
    %cst_101 = arith.constant 5.000000e-01 : f32
    %313 = vector.broadcast %cst_101 : f32 to vector<2x64xf32>
    %314 = arith.mulf %313, %312 : vector<2x64xf32>
    %cst_102 = arith.constant 5.000000e-01 : f32
    %315 = vector.broadcast %cst_102 : f32 to vector<2x64xf32>
    %316 = arith.addf %314, %315 : vector<2x64xf32>
    %317 = vector.extract_strided_slice %298 {offsets = [0, 64], sizes = [2, 64], strides = [1, 1]} : vector<2x256xf32> to vector<2x64xf32>
    %cst_103 = arith.constant 5.000000e-01 : f32
    %318 = vector.broadcast %cst_103 : f32 to vector<2x64xf32>
    %319 = arith.mulf %318, %317 : vector<2x64xf32>
    %320 = math.tanh %319 : vector<2x64xf32>
    %cst_104 = arith.constant 5.000000e-01 : f32
    %321 = vector.broadcast %cst_104 : f32 to vector<2x64xf32>
    %322 = arith.mulf %321, %320 : vector<2x64xf32>
    %cst_105 = arith.constant 5.000000e-01 : f32
    %323 = vector.broadcast %cst_105 : f32 to vector<2x64xf32>
    %324 = arith.addf %322, %323 : vector<2x64xf32>
    %325 = arith.mulf %324, %287 : vector<2x64xf32>
    %326 = arith.mulf %306, %308 : vector<2x64xf32>
    %327 = arith.addf %325, %326 : vector<2x64xf32>
    %328 = math.tanh %327 : vector<2x64xf32>
    %329 = arith.mulf %316, %328 : vector<2x64xf32>
    %330 = vector.extract_strided_slice %329 {offsets = [0, 0], sizes = [2, 32], strides = [1, 1]} : vector<2x64xf32> to vector<2x32xf32>
    %c14_106 = arith.constant 14 : index
    %c0_107 = arith.constant 0 : index
    %331 = vector.load %arg8[%c14_106, %c0_107] : memref<16x64xf32, #tpu.memory_space<vmem>>, vector<2x32xf32>
    tpu.vector_store %arg8[%c14_106, %c0_107], %330 {strides = array<i32>} : memref<16x64xf32, #tpu.memory_space<vmem>>, vector<2x32xf32>,
    %332 = vector.extract_strided_slice %329 {offsets = [0, 32], sizes = [2, 32], strides = [1, 1]} : vector<2x64xf32> to vector<2x32xf32>
    %c0_108 = arith.constant 0 : index
    %c32_109 = arith.constant 32 : index
    %333 = vector.load %arg8[%c0_108, %c32_109] : memref<16x64xf32, #tpu.memory_space<vmem>>, vector<2x32xf32>
    tpu.vector_store %arg8[%c0_108, %c32_109], %332 {strides = array<i32>} : memref<16x64xf32, #tpu.memory_space<vmem>>, vector<2x32xf32>,
    %c0_110 = arith.constant 0 : index
    %c0_111 = arith.constant 0 : index
    %334 = vector.load %arg8[%c0_110, %c0_111] : memref<16x64xf32, #tpu.memory_space<vmem>>, vector<16x64xf32>
    %335 = math.tanh %334 : vector<16x64xf32>
    %c0_112 = arith.constant 0 : index
    %c0_113 = arith.constant 0 : index
    %336 = vector.load %arg4[%c0_112, %c0_113] : memref<2x64xf32, #tpu.memory_space<vmem>>, vector<2x64xf32>
    %cst_114 = arith.constant dense<0.000000e+00> : vector<2x16xf32>
    %337 = tpu.matmul %336, %335, %cst_114 {dimension_numbers = #tpu.dot_dimension_numbers<[1], [1], [0], [0], [0, 0, 1, 0], [], []>} : vector<2x64xf32>, vector<16x64xf32>, vector<2x16xf32> -> vector<2x16xf32>
    %cst_115 = arith.constant dense<0xFF800000> : vector<2xf32>
    %338 = vector.multi_reduction <maximumf>, %337, %cst_115 [1] : vector<2x16xf32> to vector<2xf32>
    %339 = vector.shape_cast %338 : vector<2xf32> to vector<2x1xf32>
    %340 = vector.broadcast %339 : vector<2x1xf32> to vector<2x16xf32>
    %341 = arith.subf %337, %340 : vector<2x16xf32>
    %342 = math.exp %341 : vector<2x16xf32>
    %cst_116 = arith.constant dense<0.000000e+00> : vector<2xf32>
    %343 = vector.multi_reduction <add>, %342, %cst_116 [1] : vector<2x16xf32> to vector<2xf32>
    %344 = vector.shape_cast %343 : vector<2xf32> to vector<2x1xf32>
    %345 = vector.broadcast %344 : vector<2x1xf32> to vector<2x16xf32>
    %346 = arith.divf %342, %345 : vector<2x16xf32>
    %cst_117 = arith.constant dense<0.000000e+00> : vector<2x64xf32>
    %347 = tpu.matmul %346, %335, %cst_117 {dimension_numbers = #tpu.dot_dimension_numbers<[1], [0], [0], [1], [0, 0, 1, 1], [], []>} : vector<2x16xf32>, vector<16x64xf32>, vector<2x64xf32> -> vector<2x64xf32>
    %348 = math.tanh %347 : vector<2x64xf32>
    %c0_118 = arith.constant 0 : index
    %c0_119 = arith.constant 0 : index
    %349 = vector.load %arg5[%c0_118, %c0_119] : memref<64x2xf32, #tpu.memory_space<vmem>>, vector<64x2xf32>
    %cst_120 = arith.constant dense<0.000000e+00> : vector<2x2xf32>
    %350 = tpu.matmul %348, %349, %cst_120 {dimension_numbers = #tpu.dot_dimension_numbers<[1], [0], [0], [1], [0, 0, 1, 1], [], []>} : vector<2x64xf32>, vector<64x2xf32>, vector<2x2xf32> -> vector<2x2xf32>
    %c0_121 = arith.constant 0 : index
    %c0_122 = arith.constant 0 : index
    %351 = vector.load %arg6[%c0_121, %c0_122] : memref<1x2xf32, #tpu.memory_space<vmem>>, vector<1x2xf32>
    %352 = vector.broadcast %351 : vector<1x2xf32> to vector<2x2xf32>
    %353 = arith.addf %350, %352 : vector<2x2xf32>
    %c0_123 = arith.constant 0 : index
    %c0_124 = arith.constant 0 : index
    %354 = vector.load %arg7[%c0_123, %c0_124] : memref<2x2xf32, #tpu.memory_space<vmem>>, vector<2x2xf32>
    tpu.vector_store %arg7[%c0_123, %c0_124], %353 {strides = array<i32>} : memref<2x2xf32, #tpu.memory_space<vmem>>, vector<2x2xf32>,
    return
  }
}

</mosaic_0001>

<bundles_post_ra>
// kernel: my_attention_bilstm_forward.1
= control target key start
LH: loop header
LB: loop body
LE: loop exit
PB: predicated region body
PF: predicated region fallthrough
CT: control target
= control target key end

     0   :  { %12 = vsyncpa [#allocation4], 0  ;;  %s1416_s0 = inlined_call_operand.vmem [shape: f32[16,16], index: 0, kind: input, shape index: {}]   ;;  %s1417_s1 = inlined_call_operand.vmem [shape: f32[16,256], index: 1, kind: input, shape index: {}]   ;;  %s1418_s2 = inlined_call_operand.hbm [shape: f32[64,256], index: 2, kind: input, shape index: {}]   ;;  %s1419_s3 = inlined_call_operand.vmem [shape: f32[1,256], index: 3, kind: input, shape index: {}]   ;;  %s1420_s4 = inlined_call_operand.vmem [shape: f32[2,64], index: 4, kind: input, shape index: {}]   ;;  %s1421_s5 = inlined_call_operand.vmem [shape: f32[64,2], index: 5, kind: input, shape index: {}]   ;;  %s1422_s6 = inlined_call_operand.vmem [shape: f32[1,2], index: 6, kind: input, shape index: {}]   ;;  %s1423_s7 = inlined_call_operand.hbm [shape: f32[2,2], index: 7, kind: output, shape index: {}]  }
   0x1   :  { %13 = vsyncpa [#allocation5], 0  ;;  %s22_s26 = sshll.u32 %s1418_s2, 4  ;;  %s1054_s27 = smov [#allocation3]   ;;  %s23_s26 = int_to_ptr.hbm [resolvable:$true] %s22_s26 }
   0x2   :  { %s24_s28 = sshll.u32 %s1054_s27, 4  ;;  %s1055_s29 = smov 256   ;;  %s25_s28 = int_to_ptr.vmem [resolvable:$true] %s24_s28 }
   0x3   :  { %s1056_s30 = smov 16  }
   0x4   :  { %30 = dma.hbm_to_vmem [thread:$0]  %s23_s26, 2048, %s25_s28, [#allocation4], %s1055_s29, %s1055_s29, %s1056_s30  }
   0x5   :  { %1050 = dma.done.wait [#allocation4], 2048  }
   0x6   :  { %1051 = vsyncadd [#allocation4], 4294965248  ;;  %v47_v0 = vld [vmem:[%s1417_s1 + $0x10] sm:$0xff]  ;;  %v48_v1 = vld [vmem:[%s1417_s1 + $0x18] sm:$0xff]  ;;  %vm55_vm0 = vcmask 130048   ;;  %v124_v6 = vlaneseq  ;;  %vm181_vm3 = vcmask 254976  }
   0x7   :  { %v45_v2 = vld [vmem:[%s1417_s1] sm:$0xff]  ;;  %76 = vmatpush.msra.mxu0 %v47_v0  ;;  %99 = vmatpush.msra.mxu1 %v48_v1  ;;  %v46_v3 = vld [vmem:[%s1417_s1 + $0x8] sm:$0xff]  ;;  %v1163_v49 = vld [vmem:[#allocation3 + $0x60] sm:$0xff]  ;;  %vm191_vm4 = vcmask 523264   ;;  %vm183_vm5 = vcmask 517376   ;;  %vm269_vm6 = vcmask 257026  }
   0x8   :  { %v43_v4 = vld [vmem:[%s1416_s0] sm:$0xff]  ;;  %v44_v5 = vld [vmem:[%s1416_s0 + $0x8] sm:$0xff]  ;;  %v125_v7 = vand.u32 127, %v124_v6  ;;  %s1057_s0 = smov 64   ;;  %v1167_v50 = vld [vmem:[#allocation3 + $0x68] sm:$0xff]  ;;  %vm271_vm7 = vcmask 519426  }
   0x9   :  { %77 = vmatpush.msra.mxu0 %v45_v2  ;;  %100 = vmatpush.msra.mxu1 %v46_v3  ;;  %v49_v8 = vld [vmem:[%s1419_s3] sm:$0x3]  ;;  %v1161_v48 = vld [vmem:[#allocation3 + $0x78] sm:$0xff]  ;;  %v1177_v53 = vld [vmem:[#allocation3 + $0x40] sm:$0xff]  ;;  %vm351_vm8 = vcmask 259076   ;;  %vm353_vm9 = vcmask 521476  }
   0xa   :  { %899 = vmatmul.msk.f32.vlgmr.msra.gmra.mxu0 %vm55_vm0, %v43_v4  ;;  %901 = vmatmul.msk.f32.vlgmr.msra.gmra.mxu1 %vm55_vm0, %v43_v4  ;;  %v52_v10 = vperm.slane %v49_v8, 1  ;;  %v126_v12 = vadd.s32 128, %v125_v7  ;;  %v51_v13 = vperm.slane %v49_v8, 0  ;;  %v131_v15 = vand.u32 63, %v125_v7  ;;  %v1159_v47 = vld [vmem:[#allocation3 + $0x70] sm:$0xff]  ;;  %v1171_v52 = vld [vmem:[#allocation3 + $0x58] sm:$0xff] }
   0xb   :  { %202 = vmatpush.msra.mxu2 %v1159_v47  ;;  %222 = vmatpush.msra.mxu3 %v1161_v48  ;;  %v1169_v51 = vld [vmem:[#allocation3 + $0x50] sm:$0xff]  ;;  %v1179_v54 = vld [vmem:[#allocation3 + $0x48] sm:$0xff]  ;;  %v1187_v56 = vld [vmem:[#allocation3 + $0x38] sm:$0xff]  ;;  %vm433_vm10 = vcmask 261126   ;;  %vm435_vm11 = vcmask 523526   ;;  %vm796_vm12 = vcmask 123904  }
   0xc   :  { %v138_v16 = vand.u32 63, %v126_v12  ;;  %vm151_vm1 = vcmp.lt.s32.totalorder %v131_v15, 32  ;;  %286 = vmatpush.msrb.mxu0 %v1159_v47  ;;  %306 = vmatpush.msrb.mxu1 %v1161_v48  ;;  %v1185_v55 = vld [vmem:[#allocation3 + $0x30] sm:$0xff]  ;;  %v1193_v57 = vld [vmem:[#allocation3 + $0x20] sm:$0xff]  ;;  %v1195_v58 = vld [vmem:[#allocation3 + $0x28] sm:$0xff]  ;;  %s1058_s14 = smov [#allocation6]  }
   0xd   :  { %203 = vmatpush.msra.mxu2 %v1163_v49  ;;  %223 = vmatpush.msra.mxu3 %v1167_v50  ;;  %v1201_v59 = vld [vmem:[#allocation3 + $0x10] sm:$0xff]  ;;  %v1203_v60 = vld [vmem:[#allocation3 + $0x18] sm:$0xff]  ;;  %v1210_v62 = vld [vmem:[#allocation3] sm:$0xff]  ;;  %s887_s15 = sshll.u32 %s1058_s14, 4  ;;  %s889_s18 = sshll.u32 %s1423_s7, 4  ;;  %s888_s15 = int_to_ptr.vmem [resolvable:$true] %s887_s15  ;;  %s890_s18 = int_to_ptr.hbm [resolvable:$true] %s889_s18 }
   0xe   :  { %vm1127_vm2 = vcmp.lt.s32.totalorder %v138_v16, 32  ;;  %287 = vmatpush.msrb.mxu0 %v1163_v49  ;;  %307 = vmatpush.msrb.mxu1 %v1167_v50  ;;  %v1212_v63 = vld [vmem:[#allocation3 + $0x8] sm:$0xff] }
   0xf   :  { %204 = vmatpush.msra.mxu2 %v1169_v51  ;;  %224 = vmatpush.msra.mxu3 %v1171_v52 }
  0x10   :  { %288 = vmatpush.msrb.mxu0 %v1169_v51  ;;  %308 = vmatpush.msrb.mxu1 %v1171_v52 }
  0x11   :  { %205 = vmatpush.msra.mxu2 %v1177_v53  ;;  %225 = vmatpush.msra.mxu3 %v1179_v54 }
  0x12   :  { %900 = vmatmul.msk.f32.gmra.mxu0 %vm55_vm0, %v44_v5  ;;  %902 = vmatmul.msk.f32.gmra.mxu1 %vm55_vm0, %v44_v5 }
  0x13   :  { %289 = vmatpush.msrb.mxu0 %v1177_v53  ;;  %309 = vmatpush.msrb.mxu1 %v1179_v54 }
  0x14   :  { %206 = vmatpush.msra.mxu2 %v1185_v55  ;;  %226 = vmatpush.msra.mxu3 %v1187_v56 }
  0x15   :  { %290 = vmatpush.msrb.mxu0 %v1185_v55  ;;  %310 = vmatpush.msrb.mxu1 %v1187_v56 }
  0x16   :  { %207 = vmatpush.msra.mxu2 %v1193_v57  ;;  %227 = vmatpush.msra.mxu3 %v1195_v58 }
  0x17   :  { %291 = vmatpush.msrb.mxu0 %v1193_v57  ;;  %311 = vmatpush.msrb.mxu1 %v1195_v58 }
  0x18   :  { %208 = vmatpush.msra.mxu2 %v1201_v59  ;;  %228 = vmatpush.msra.mxu3 %v1203_v60 }
  0x19   :  { %292 = vmatpush.msrb.mxu0 %v1201_v59  ;;  %312 = vmatpush.msrb.mxu1 %v1203_v60 }
  0x1a   :  { %209 = vmatpush.msra.mxu2 %v1210_v62  ;;  %229 = vmatpush.msra.mxu3 %v1212_v63 }
  0x1b   :  { %293 = vmatpush.msrb.mxu0 %v1210_v62  ;;  %313 = vmatpush.msrb.mxu1 %v1212_v63 }
  0x1c   :  { %368 = vmatpush.msrb.mxu2 %v1159_v47  ;;  %388 = vmatpush.msrb.mxu3 %v1161_v48 }
  0x1d   :  { %458 = vmatpush.msra.mxu0 %v1159_v47  ;;  %478 = vmatpush.msra.mxu1 %v1161_v48 }
  0x1e   :  { %369 = vmatpush.msrb.mxu2 %v1163_v49  ;;  %389 = vmatpush.msrb.mxu3 %v1167_v50 }
  0x1f   :  { %459 = vmatpush.msra.mxu0 %v1163_v49  ;;  %479 = vmatpush.msra.mxu1 %v1167_v50 }
  0x20   :  { %370 = vmatpush.msrb.mxu2 %v1169_v51  ;;  %390 = vmatpush.msrb.mxu3 %v1171_v52 }
  0x21   :  { %460 = vmatpush.msra.mxu0 %v1169_v51  ;;  %480 = vmatpush.msra.mxu1 %v1171_v52 }
  0x22   :  { %371 = vmatpush.msrb.mxu2 %v1177_v53  ;;  %391 = vmatpush.msrb.mxu3 %v1179_v54 }
  0x23   :  { %461 = vmatpush.msra.mxu0 %v1177_v53  ;;  %481 = vmatpush.msra.mxu1 %v1179_v54 }
  0x24   :  { %372 = vmatpush.msrb.mxu2 %v1185_v55  ;;  %392 = vmatpush.msrb.mxu3 %v1187_v56 }
  0x25   :  { %462 = vmatpush.msra.mxu0 %v1185_v55  ;;  %482 = vmatpush.msra.mxu1 %v1187_v56 }
  0x26   :  { %373 = vmatpush.msrb.mxu2 %v1193_v57  ;;  %393 = vmatpush.msrb.mxu3 %v1195_v58 }
  0x27   :  { %463 = vmatpush.msra.mxu0 %v1193_v57  ;;  %483 = vmatpush.msra.mxu1 %v1195_v58 }
  0x28   :  { %374 = vmatpush.msrb.mxu2 %v1201_v59  ;;  %394 = vmatpush.msrb.mxu3 %v1203_v60 }
  0x29   :  { %464 = vmatpush.msra.mxu0 %v1201_v59  ;;  %484 = vmatpush.msra.mxu1 %v1203_v60 }
  0x2a   :  { %375 = vmatpush.msrb.mxu2 %v1210_v62  ;;  %395 = vmatpush.msrb.mxu3 %v1212_v63 }
  0x2b   :  { %465 = vmatpush.msra.mxu0 %v1210_v62  ;;  %485 = vmatpush.msra.mxu1 %v1212_v63 }
  0x87   :  { %v79_v9 = vpop.f32.mrf.mxu0  ;;  %v102_v11 = vpop.f32.mrf.mxu1 }
  0x88   :  { %v103_v14 = vadd.f32 %v102_v11, %v52_v10  ;;  %v80_v17 = vadd.f32 %v79_v9, %v51_v13 }
  0x8a   :  { %v440_v20 = vrot.slane %v103_v14, 6  ;;  %v520_v21 = vrot.slane %v103_v14, 2  ;;  %v439_v25 = vrot.slane %v80_v17, 6  ;;  %v519_v26 = vrot.slane %v80_v17, 2 }
  0x8f   :  { %v82_v18 = vpop.f32.mrf.mxu0  ;;  %v105_v19 = vpop.f32.mrf.mxu1 }
  0x90   :  { %v83_v22 = vadd.f32 %v82_v18, %v51_v13  ;;  %v106_v23 = vadd.f32 %v105_v19, %v52_v10 }
  0x92   :  { %v155_v27 = vrot.slane %v83_v22, 6  ;;  %v185_v28 = vrot.slane %v83_v22, 2  ;;  %v186_v29 = vrot.slane %v106_v23, 2  ;;  %v1131_v30 = vsel %vm151_vm1, %v83_v22, %v439_v25 }
  0x93   :  { %v1135_v31 = vsel %vm1127_vm2, %v106_v23, %v440_v20  ;;  %v1137_v32 = vsel %vm151_vm1, %v83_v22, %v519_v26  ;;  %v1141_v33 = vsel %vm1127_vm2, %v106_v23, %v520_v21  ;;  %v156_v34 = vrot.slane %v106_v23, 6 }
  0x94   :  { %v1143_v35 = vsel %vm151_vm1, %v80_v17, %v155_v27  ;;  %v1145_v36 = vsel %vm151_vm1, %v80_v17, %v185_v28  ;;  %v1149_v37 = vsel %vm1127_vm2, %v103_v14, %v186_v29 }
  0x95   :  { %v161_v38 = vmul.f32 0.5, %v1143_v35  ;;  %v1154_v39 = vsel %vm1127_vm2, %v103_v14, %v156_v34 }
  0x96   :  { %v166_v61 = vmul.f32 0.5, %v1154_v39 }
  0x97   :  { %928 = vtanh.f32 %v161_v38 }
  0x98   :  { %930 = vtanh.f32 %v1154_v39 }
  0x9d   :  { %v929_v40 = vpop.eup %928 }
  0x9e   :  { %v163_v41 = vmul.f32 0.5, %v929_v40  ;;  %v931_v43 = vpop.eup %930 }
  0xa0   :  { %v164_v42 = vadd.f32 0.5, %v163_v41 }
  0xa2   :  { %v170_v44 = vmul.f32 %v931_v43, %v164_v42 }
  0xa4   :  { %v252_v45 = vrot.slane %v170_v44, 6  ;;  %932 = vtanh.f32 %v170_v44 }
  0xa5   :  { %934 = vtanh.f32 %v166_v61 }
  0xa6   :  { %253 = vrot.lane.b32.xlu1 %v252_v45, %s1057_s0 }
  0xaa   :  { %v933_v46 = vpop.eup %932 }
  0xab   :  { %173 = vrot.lane.b32.xlu0 %v933_v46, %s1057_s0  ;;  %v935_v0 = vpop.eup %934 }
  0xac   :  { %v168_v1 = vmul.f32 0.5, %v935_v0 }
  0xae   :  { %v169_v2 = vadd.f32 0.5, %v168_v1 }
 0x118   :  { %v254_v19 = vpop.permute.xlu1 %253 }
 0x11d   :  { %v174_v3 = vpop.permute.xlu0 %173 }
 0x11e   :  { %v176_v4 = vmul.f32 %v174_v3, %v169_v2 }
 0x120   :  { %178 = vrot.lane.b32.xlu0 %v176_v4, %s1057_s0 }
 0x192   :  { %v179_v5 = vpop.permute.xlu0 %178 }
 0x193   :  { %182 = vst.msk [vmem:[#allocation2] sm:$0x3] %vm181_vm3, %v179_v5  ;;  %903 = vmatmul.msk.f32.vlgmr.msra.gmra.mxu2 %vm191_vm4, %v179_v5  ;;  %904 = vmatmul.msk.f32.vlgmr.msra.gmra.mxu3 %vm191_vm4, %v179_v5 }
 0x194   :  { %184 = vst.msk [vmem:[#allocation2 + $0xe] sm:$0x3] %vm183_vm5, %v179_v5  ;;  %535 = vmatpush.msra.mxu2 %v1159_v47  ;;  %555 = vmatpush.msra.mxu3 %v1161_v48 }
 0x196   :  { %536 = vmatpush.msra.mxu2 %v1163_v49  ;;  %556 = vmatpush.msra.mxu3 %v1167_v50 }
 0x198   :  { %537 = vmatpush.msra.mxu2 %v1169_v51  ;;  %557 = vmatpush.msra.mxu3 %v1171_v52 }
 0x19a   :  { %538 = vmatpush.msra.mxu2 %v1177_v53  ;;  %558 = vmatpush.msra.mxu3 %v1179_v54 }
 0x19c   :  { %539 = vmatpush.msra.mxu2 %v1185_v55  ;;  %559 = vmatpush.msra.mxu3 %v1187_v56 }
 0x19e   :  { %540 = vmatpush.msra.mxu2 %v1193_v57  ;;  %560 = vmatpush.msra.mxu3 %v1195_v58 }
 0x1a0   :  { %541 = vmatpush.msra.mxu2 %v1201_v59  ;;  %561 = vmatpush.msra.mxu3 %v1203_v60 }
 0x1a2   :  { %542 = vmatpush.msra.mxu2 %v1210_v62  ;;  %562 = vmatpush.msra.mxu3 %v1212_v63 }
 0x216   :  { %v211_v6 = vpop.f32.mrf.mxu2  ;;  %v231_v7 = vpop.f32.mrf.mxu3 }
 0x217   :  { %v236_v8 = vrot.slane %v211_v6, 6  ;;  %v237_v10 = vrot.slane %v231_v7, 6 }
 0x219   :  { %v240_v9 = vadd.f32 %v236_v8, %v1145_v36  ;;  %v241_v12 = vadd.f32 %v237_v10, %v1149_v37 }
 0x21b   :  { %v242_v11 = vmul.f32 0.5, %v240_v9  ;;  %v247_v18 = vmul.f32 0.5, %v241_v12 }
 0x21d   :  { %936 = vtanh.f32 %v242_v11 }
 0x21e   :  { %938 = vtanh.f32 %v241_v12 }
 0x21f   :  { %940 = vtanh.f32 %v247_v18 }
 0x223   :  { %v937_v13 = vpop.eup %936 }
 0x224   :  { %v244_v14 = vmul.f32 0.5, %v937_v13  ;;  %v939_v16 = vpop.eup %938 }
 0x225   :  { %v941_v22 = vpop.eup %940 }
 0x226   :  { %v245_v15 = vadd.f32 0.5, %v244_v14  ;;  %v249_v24 = vmul.f32 0.5, %v941_v22 }
 0x228   :  { %v257_v17 = vmul.f32 %v939_v16, %v245_v15  ;;  %v256_v20 = vmul.f32 %v254_v19, %v245_v15  ;;  %v250_v25 = vadd.f32 0.5, %v249_v24 }
 0x22a   :  { %259 = vrot.lane.b32.xlu1 %v257_v17, %s1057_s0 }
 0x29c   :  { %v260_v21 = vpop.permute.xlu1 %259 }
 0x29d   :  { %v262_v23 = vadd.f32 %v260_v21, %v256_v20 }
 0x29f   :  { %942 = vtanh.f32 %v262_v23  ;;  %v336_v61 = vrot.slane %v262_v23, 6 }
 0x2a5   :  { %v943_v26 = vpop.eup %942 }
 0x2a6   :  { %v1280_v27 = vmul.f32 %v943_v26, %v250_v25 }
 0x2a8   :  { %v273_v28 = vrot.slane %v1280_v27, 2 }
 0x2aa   :  { %274 = vrot.lane.b32.xlu2 %v273_v28, %s1057_s0 }
 0x304   :  { %v275_v29 = vpop.permute.xlu2 %274 }
 0x305   :  { %905 = vmatmul.msk.f32.vlgmr.msrb.gmra.mxu0 %vm191_vm4, %v275_v29  ;;  %906 = vmatmul.msk.f32.vlgmr.msrb.gmra.mxu1 %vm191_vm4, %v275_v29 }
 0x306   :  { %615 = vmatpush.msrb.mxu0 %v1159_v47  ;;  %635 = vmatpush.msrb.mxu1 %v1161_v48 }
 0x308   :  { %616 = vmatpush.msrb.mxu0 %v1163_v49  ;;  %636 = vmatpush.msrb.mxu1 %v1167_v50 }
 0x30a   :  { %617 = vmatpush.msrb.mxu0 %v1169_v51  ;;  %637 = vmatpush.msrb.mxu1 %v1171_v52 }
 0x30c   :  { %618 = vmatpush.msrb.mxu0 %v1177_v53  ;;  %638 = vmatpush.msrb.mxu1 %v1179_v54 }
 0x30e   :  { %619 = vmatpush.msrb.mxu0 %v1185_v55  ;;  %639 = vmatpush.msrb.mxu1 %v1187_v56 }
 0x310   :  { %620 = vmatpush.msrb.mxu0 %v1193_v57  ;;  %640 = vmatpush.msrb.mxu1 %v1195_v58 }
 0x312   :  { %621 = vmatpush.msrb.mxu0 %v1201_v59  ;;  %641 = vmatpush.msrb.mxu1 %v1203_v60 }
 0x314   :  { %622 = vmatpush.msrb.mxu0 %v1210_v62  ;;  %642 = vmatpush.msrb.mxu1 %v1212_v63 }
 0x382   :  { %v295_v34 = vpop.f32.mrf.mxu0  ;;  %v315_v38 = vpop.f32.mrf.mxu1 }
 0x383   :  { %v320_v40 = vrot.slane %v295_v34, 4  ;;  %v321_v42 = vrot.slane %v315_v38, 4 }
 0x385   :  { %v324_v41 = vadd.f32 %v320_v40, %v1143_v35  ;;  %v325_v44 = vadd.f32 %v321_v42, %v1154_v39 }
 0x387   :  { %v326_v43 = vmul.f32 0.5, %v324_v41  ;;  %v331_v4 = vmul.f32 0.5, %v325_v44 }
 0x389   :  { %944 = vtanh.f32 %v326_v43 }
 0x38a   :  { %946 = vtanh.f32 %v325_v44 }
 0x38b   :  { %948 = vtanh.f32 %v331_v4 }
 0x38f   :  { %v945_v45 = vpop.eup %944 }
 0x390   :  { %v328_v46 = vmul.f32 0.5, %v945_v45  ;;  %v947_v1 = vpop.eup %946 }
 0x391   :  { %v949_v6 = vpop.eup %948 }
 0x392   :  { %v329_v0 = vadd.f32 0.5, %v328_v46  ;;  %v333_v7 = vmul.f32 0.5, %v949_v6 }
 0x394   :  { %v339_v2 = vmul.f32 %v947_v1, %v329_v0  ;;  %v338_v3 = vmul.f32 %v336_v61, %v329_v0  ;;  %v334_v8 = vadd.f32 0.5, %v333_v7 }
 0x396   :  { %341 = vrot.lane.b32.xlu2 %v339_v2, %s1057_s0 }
 0x3f0   :  { %v342_v5 = vpop.permute.xlu2 %341 }
 0x3f1   :  { %v344_v35 = vadd.f32 %v342_v5, %v338_v3 }
 0x3f3   :  { %950 = vtanh.f32 %v344_v35 }
 0x3f9   :  { %v951_v9 = vpop.eup %950 }
 0x3fa   :  { %v1305_v39 = vmul.f32 %v951_v9, %v334_v8 }
 0x3fc   :  { %v355_v10 = vrot.slane %v1305_v39, 4 }
 0x3fe   :  { %356 = vrot.lane.b32.xlu0 %v355_v10, %s1057_s0 }
 0x470   :  { %v357_v11 = vpop.permute.xlu0 %356 }
 0x471   :  { %907 = vmatmul.msk.f32.vlgmr.msrb.gmra.mxu2 %vm191_vm4, %v357_v11  ;;  %908 = vmatmul.msk.f32.vlgmr.msrb.gmra.mxu3 %vm191_vm4, %v357_v11 }
 0x472   :  { %695 = vmatpush.msrb.mxu2 %v1159_v47  ;;  %715 = vmatpush.msrb.mxu3 %v1161_v48 }
 0x474   :  { %696 = vmatpush.msrb.mxu2 %v1163_v49  ;;  %716 = vmatpush.msrb.mxu3 %v1167_v50 }
 0x476   :  { %697 = vmatpush.msrb.mxu2 %v1169_v51  ;;  %717 = vmatpush.msrb.mxu3 %v1171_v52 }
 0x478   :  { %698 = vmatpush.msrb.mxu2 %v1177_v53  ;;  %718 = vmatpush.msrb.mxu3 %v1179_v54 }
 0x47a   :  { %699 = vmatpush.msrb.mxu2 %v1185_v55  ;;  %719 = vmatpush.msrb.mxu3 %v1187_v56  ;;  %v418_v56 = vrot.slane %v344_v35, 6 }
 0x47c   :  { %700 = vmatpush.msrb.mxu2 %v1193_v57  ;;  %720 = vmatpush.msrb.mxu3 %v1195_v58 }
 0x47e   :  { %701 = vmatpush.msrb.mxu2 %v1201_v59  ;;  %721 = vmatpush.msrb.mxu3 %v1203_v60 }
 0x480   :  { %702 = vmatpush.msrb.mxu2 %v1210_v62  ;;  %722 = vmatpush.msrb.mxu3 %v1212_v63 }
 0x4f4   :  { %v377_v47 = vpop.f32.mrf.mxu2  ;;  %v397_v48 = vpop.f32.mrf.mxu3 }
 0x4f5   :  { %v402_v49 = vrot.slane %v377_v47, 2  ;;  %v403_v51 = vrot.slane %v397_v48, 2 }
 0x4f7   :  { %v406_v50 = vadd.f32 %v402_v49, %v1145_v36  ;;  %v407_v53 = vadd.f32 %v403_v51, %v1149_v37 }
 0x4f9   :  { %v408_v52 = vmul.f32 0.5, %v406_v50  ;;  %v413_v62 = vmul.f32 0.5, %v407_v53 }
 0x4fb   :  { %952 = vtanh.f32 %v408_v52 }
 0x4fc   :  { %954 = vtanh.f32 %v407_v53 }
 0x4fd   :  { %956 = vtanh.f32 %v413_v62 }
 0x501   :  { %v953_v54 = vpop.eup %952 }
 0x502   :  { %v410_v55 = vmul.f32 0.5, %v953_v54  ;;  %v955_v58 = vpop.eup %954 }
 0x503   :  { %v957_v12 = vpop.eup %956 }
 0x504   :  { %v411_v57 = vadd.f32 0.5, %v410_v55  ;;  %v415_v13 = vmul.f32 0.5, %v957_v12 }
 0x506   :  { %v421_v59 = vmul.f32 %v955_v58, %v411_v57  ;;  %v420_v60 = vmul.f32 %v418_v56, %v411_v57  ;;  %v416_v14 = vadd.f32 0.5, %v415_v13 }
 0x508   :  { %423 = vrot.lane.b32.xlu1 %v421_v59, %s1057_s0 }
 0x57a   :  { %v424_v63 = vpop.permute.xlu1 %423 }
 0x57b   :  { %v426_v36 = vadd.f32 %v424_v63, %v420_v60 }
 0x57d   :  { %958 = vtanh.f32 %v426_v36  ;;  %v502_v25 = vrot.slane %v426_v36, 6 }
 0x583   :  { %v959_v15 = vpop.eup %958 }
 0x584   :  { %v1330_v37 = vmul.f32 %v959_v15, %v416_v14 }
 0x586   :  { %v445_v16 = vrot.slane %v1330_v37, 6 }
 0x588   :  { %446 = vrot.lane.b32.xlu2 %v445_v16, %s1057_s0 }
 0x5e2   :  { %v447_v17 = vpop.permute.xlu2 %446 }
 0x5e3   :  { %909 = vmatmul.msk.f32.vlgmr.msra.gmra.mxu0 %vm191_vm4, %v447_v17  ;;  %910 = vmatmul.msk.f32.vlgmr.msra.gmra.mxu1 %vm191_vm4, %v447_v17 }
 0x660   :  { %v467_v18 = vpop.f32.mrf.mxu0  ;;  %v487_v20 = vpop.f32.mrf.mxu1 }
 0x661   :  { %v490_v19 = vadd.f32 %v467_v18, %v1131_v30  ;;  %v491_v22 = vadd.f32 %v487_v20, %v1135_v31 }
 0x663   :  { %v492_v21 = vmul.f32 0.5, %v490_v19  ;;  %v497_v38 = vmul.f32 0.5, %v491_v22 }
 0x665   :  { %960 = vtanh.f32 %v492_v21 }
 0x666   :  { %962 = vtanh.f32 %v491_v22 }
 0x667   :  { %964 = vtanh.f32 %v497_v38 }
 0x66b   :  { %v961_v23 = vpop.eup %960 }
 0x66c   :  { %v494_v24 = vmul.f32 0.5, %v961_v23  ;;  %v963_v28 = vpop.eup %962 }
 0x66d   :  { %v965_v41 = vpop.eup %964 }
 0x66e   :  { %v495_v26 = vadd.f32 0.5, %v494_v24  ;;  %v499_v43 = vmul.f32 0.5, %v965_v41 }
 0x670   :  { %v505_v29 = vmul.f32 %v963_v28, %v495_v26  ;;  %v504_v34 = vmul.f32 %v502_v25, %v495_v26  ;;  %v500_v44 = vadd.f32 0.5, %v499_v43 }
 0x672   :  { %507 = vrot.lane.b32.xlu0 %v505_v29, %s1057_s0 }
 0x6e4   :  { %v508_v40 = vpop.permute.xlu0 %507 }
 0x6e5   :  { %v510_v42 = vadd.f32 %v508_v40, %v504_v34 }
 0x6e7   :  { %966 = vtanh.f32 %v510_v42  ;;  %v585_v8 = vrot.slane %v510_v42, 6 }
 0x6ed   :  { %v967_v45 = vpop.eup %966 }
 0x6ee   :  { %v512_v46 = vmul.f32 %v967_v45, %v500_v44 }
 0x6f0   :  { %514 = vrot.lane.b32.xlu1 %v512_v46, %s1057_s0 }
 0x762   :  { %v1340_v61 = vpop.permute.xlu1 %514 }
 0x763   :  { %911 = vmatmul.msk.f32.vlgmr.msra.gmra.mxu2 %vm191_vm4, %v1340_v61  ;;  %912 = vmatmul.msk.f32.vlgmr.msra.gmra.mxu3 %vm191_vm4, %v1340_v61 }
 0x7e6   :  { %v544_v0 = vpop.f32.mrf.mxu2  ;;  %v564_v1 = vpop.f32.mrf.mxu3 }
 0x7e7   :  { %v569_v2 = vrot.slane %v544_v0, 6  ;;  %v570_v4 = vrot.slane %v564_v1, 6 }
 0x7e9   :  { %v573_v3 = vadd.f32 %v569_v2, %v1137_v32  ;;  %v574_v6 = vadd.f32 %v570_v4, %v1141_v33 }
 0x7eb   :  { %v575_v5 = vmul.f32 0.5, %v573_v3  ;;  %v580_v48 = vmul.f32 0.5, %v574_v6 }
 0x7ed   :  { %968 = vtanh.f32 %v575_v5 }
 0x7ee   :  { %970 = vtanh.f32 %v574_v6 }
 0x7ef   :  { %972 = vtanh.f32 %v580_v48 }
 0x7f3   :  { %v969_v35 = vpop.eup %968 }
 0x7f4   :  { %v577_v7 = vmul.f32 0.5, %v969_v35  ;;  %v971_v10 = vpop.eup %970 }
 0x7f5   :  { %v973_v50 = vpop.eup %972 }
 0x7f6   :  { %v578_v9 = vadd.f32 0.5, %v577_v7  ;;  %v582_v52 = vmul.f32 0.5, %v973_v50 }
 0x7f8   :  { %v588_v11 = vmul.f32 %v971_v10, %v578_v9  ;;  %v587_v47 = vmul.f32 %v585_v8, %v578_v9  ;;  %v583_v53 = vadd.f32 0.5, %v582_v52 }
 0x7fa   :  { %590 = vrot.lane.b32.xlu2 %v588_v11, %s1057_s0 }
 0x854   :  { %v591_v49 = vpop.permute.xlu2 %590 }
 0x855   :  { %v593_v51 = vadd.f32 %v591_v49, %v587_v47 }
 0x857   :  { %974 = vtanh.f32 %v593_v51  ;;  %v665_v15 = vrot.slane %v593_v51, 6  ;;  %v766_v51 = vld [vmem:[%s1420_s4] sm:$0x3] }
 0x85d   :  { %v975_v54 = vpop.eup %974 }
 0x85e   :  { %v595_v55 = vmul.f32 %v975_v54, %v583_v53 }
 0x860   :  { %v602_v56 = vrot.slane %v595_v55, 2 }
 0x862   :  { %603 = vrot.lane.b32.xlu0 %v602_v56, %s1057_s0 }
 0x8d4   :  { %v604_v57 = vpop.permute.xlu0 %603 }
 0x8d5   :  { %913 = vmatmul.msk.f32.vlgmr.msrb.gmra.mxu0 %vm191_vm4, %v604_v57  ;;  %914 = vmatmul.msk.f32.vlgmr.msrb.gmra.mxu1 %vm191_vm4, %v604_v57 }
 0x952   :  { %v624_v58 = vpop.f32.mrf.mxu0  ;;  %v644_v59 = vpop.f32.mrf.mxu1 }
 0x953   :  { %v649_v60 = vrot.slane %v624_v58, 4  ;;  %v650_v63 = vrot.slane %v644_v59, 4  ;;  %v852_v58 = vld [vmem:[%s1421_s5 + $0x38] sm:$0xff]  ;;  %v851_v59 = vld [vmem:[%s1421_s5 + $0x30] sm:$0xff] }
 0x954   :  { %868 = vmatpush.msra.mxu0 %v852_v58 }
 0x955   :  { %v653_v62 = vadd.f32 %v649_v60, %v1131_v30  ;;  %v654_v36 = vadd.f32 %v650_v63, %v1135_v31  ;;  %v850_v60 = vld [vmem:[%s1421_s5 + $0x28] sm:$0xff] }
 0x956   :  { %869 = vmatpush.msra.mxu0 %v851_v59 }
 0x957   :  { %v655_v12 = vmul.f32 0.5, %v653_v62  ;;  %v660_v30 = vmul.f32 0.5, %v654_v36  ;;  %v849_v62 = vld [vmem:[%s1421_s5 + $0x20] sm:$0xff] }
 0x958   :  { %870 = vmatpush.msra.mxu0 %v850_v60 }
 0x959   :  { %976 = vtanh.f32 %v655_v12 }
 0x95a   :  { %978 = vtanh.f32 %v654_v36  ;;  %871 = vmatpush.msra.mxu0 %v849_v62 }
 0x95b   :  { %980 = vtanh.f32 %v660_v30 }
 0x95f   :  { %v977_v13 = vpop.eup %976 }
 0x960   :  { %v657_v14 = vmul.f32 0.5, %v977_v13  ;;  %v979_v17 = vpop.eup %978 }
 0x961   :  { %v981_v21 = vpop.eup %980 }
 0x962   :  { %v658_v16 = vadd.f32 0.5, %v657_v14  ;;  %v662_v22 = vmul.f32 0.5, %v981_v21  ;;  %v848_v21 = vld [vmem:[%s1421_s5 + $0x18] sm:$0xff] }
 0x963   :  { %872 = vmatpush.msra.mxu0 %v848_v21 }
 0x964   :  { %v668_v18 = vmul.f32 %v979_v17, %v658_v16  ;;  %v667_v19 = vmul.f32 %v665_v15, %v658_v16  ;;  %v663_v23 = vadd.f32 0.5, %v662_v22  ;;  %v846_v22 = vld [vmem:[%s1421_s5 + $0x8] sm:$0xff] }
 0x966   :  { %670 = vrot.lane.b32.xlu1 %v668_v18, %s1057_s0 }
 0x96e   :  { %266 = vrot.lane.b32.xlu1 %v1280_v27, %s1057_s0 }
 0x976   :  { %597 = vrot.lane.b32.xlu1 %v595_v55, %s1057_s0 }
 0x9d8   :  { %v671_v20 = vpop.permute.xlu1 %670 }
 0x9d9   :  { %v673_v31 = vadd.f32 %v671_v20, %v667_v19 }
 0x9db   :  { %982 = vtanh.f32 %v673_v31  ;;  %v745_v1 = vrot.slane %v673_v31, 6  ;;  %v847_v31 = vld [vmem:[%s1421_s5 + $0x10] sm:$0xff] }
 0x9dc   :  { %873 = vmatpush.msra.mxu0 %v847_v31 }
 0x9de   :  { %874 = vmatpush.msra.mxu0 %v846_v22 }
 0x9e0   :  { %v267_v24 = vpop.permute.xlu1 %266 }
 0x9e1   :  { %v983_v25 = vpop.eup %982  ;;  %270 = vst.msk [vmem:[#allocation2] sm:$0xc] %vm269_vm6, %v267_v24 }
 0x9e2   :  { %272 = vst.msk [vmem:[#allocation2 + $0xa] sm:$0xc] %vm271_vm7, %v267_v24  ;;  %v675_v26 = vmul.f32 %v983_v25, %v663_v23  ;;  %v845_v23 = vld [vmem:[%s1421_s5] sm:$0xff] }
 0x9e3   :  { %875 = vmatpush.msra.mxu0 %v845_v23 }
 0x9e4   :  { %v682_v27 = vrot.slane %v675_v26, 4 }
 0x9e6   :  { %683 = vrot.lane.b32.xlu2 %v682_v27, %s1057_s0 }
 0x9e8   :  { %v598_v34 = vpop.permute.xlu1 %597 }
 0x9ee   :  { %348 = vrot.lane.b32.xlu2 %v1305_v39, %s1057_s0 }
 0x9f6   :  { %677 = vrot.lane.b32.xlu2 %v675_v26, %s1057_s0  ;;  %v927_v26 = vld [vmem:[%s1422_s6] ss:$0 sm:$0xff] }
 0xa40   :  { %v684_v28 = vpop.permute.xlu2 %683 }
 0xa41   :  { %915 = vmatmul.msk.f32.vlgmr.msrb.gmra.mxu2 %vm191_vm4, %v684_v28  ;;  %916 = vmatmul.msk.f32.vlgmr.msrb.gmra.mxu3 %vm191_vm4, %v684_v28 }
 0xa48   :  { %v349_v29 = vpop.permute.xlu2 %348 }
 0xa49   :  { %352 = vst.msk [vmem:[#allocation2] sm:$0x30] %vm351_vm8, %v349_v29 }
 0xa4a   :  { %354 = vst.msk [vmem:[#allocation2 + $0x6] sm:$0x30] %vm353_vm9, %v349_v29 }
 0xa4b   :  { %600 = vst.msk [vmem:[#allocation2 + $0x8] sm:$0xc] %vm269_vm6, %v598_v34 }
 0xa4c   :  { %601 = vst.msk [vmem:[#allocation2 + $0x2] sm:$0xc] %vm271_vm7, %v598_v34 }
 0xa50   :  { %v678_v38 = vpop.permute.xlu2 %677 }
 0xa51   :  { %680 = vst.msk [vmem:[#allocation2 + $0x8] sm:$0x30] %vm351_vm8, %v678_v38 }
 0xa52   :  { %681 = vst.msk [vmem:[#allocation2 - $0x2] sm:$0x30] %vm353_vm9, %v678_v38 }
 0xac4   :  { %v704_v39 = vpop.f32.mrf.mxu2  ;;  %v724_v40 = vpop.f32.mrf.mxu3 }
 0xac5   :  { %v729_v41 = vrot.slane %v704_v39, 2  ;;  %v730_v43 = vrot.slane %v724_v40, 2 }
 0xac7   :  { %v733_v42 = vadd.f32 %v729_v41, %v1137_v32  ;;  %v734_v45 = vadd.f32 %v730_v43, %v1141_v33 }
 0xac9   :  { %v735_v44 = vmul.f32 0.5, %v733_v42  ;;  %v740_v6 = vmul.f32 0.5, %v734_v45 }
 0xacb   :  { %984 = vtanh.f32 %v735_v44 }
 0xacc   :  { %986 = vtanh.f32 %v734_v45 }
 0xacd   :  { %988 = vtanh.f32 %v740_v6 }
 0xad1   :  { %v985_v46 = vpop.eup %984 }
 0xad2   :  { %v737_v0 = vmul.f32 0.5, %v985_v46  ;;  %v987_v3 = vpop.eup %986 }
 0xad3   :  { %v989_v35 = vpop.eup %988 }
 0xad4   :  { %v738_v2 = vadd.f32 0.5, %v737_v0  ;;  %v742_v33 = vmul.f32 0.5, %v989_v35 }
 0xad6   :  { %v748_v4 = vmul.f32 %v987_v3, %v738_v2  ;;  %v747_v5 = vmul.f32 %v745_v1, %v738_v2  ;;  %v743_v9 = vadd.f32 0.5, %v742_v33 }
 0xad8   :  { %750 = vrot.lane.b32.xlu0 %v748_v4, %s1057_s0 }
 0xae0   :  { %430 = vrot.lane.b32.xlu0 %v1330_v37, %s1057_s0 }
 0xb4a   :  { %v751_v32 = vpop.permute.xlu0 %750 }
 0xb4b   :  { %v753_v7 = vadd.f32 %v751_v32, %v747_v5 }
 0xb4d   :  { %990 = vtanh.f32 %v753_v7 }
 0xb52   :  { %v431_v8 = vpop.permute.xlu0 %430 }
 0xb53   :  { %v991_v10 = vpop.eup %990  ;;  %434 = vst.msk [vmem:[#allocation2] sm:$0xc0] %vm433_vm10, %v431_v8 }
 0xb54   :  { %436 = vst.msk [vmem:[#allocation2 + $0x2] sm:$0xc0] %vm435_vm11, %v431_v8  ;;  %v755_v11 = vmul.f32 %v991_v10, %v743_v9 }
 0xb55   :  { %517 = vst.msk [vmem:[#allocation2 + $0x8] sm:$0x3] %vm181_vm3, %v1340_v61 }
 0xb56   :  { %518 = vst.msk [vmem:[#allocation2 + $0x6] sm:$0x3] %vm183_vm5, %v1340_v61  ;;  %757 = vrot.lane.b32.xlu0 %v755_v11, %s1057_s0 }
 0xbc8   :  { %v758_v37 = vpop.permute.xlu0 %757 }
 0xbc9   :  { %760 = vst.msk [vmem:[#allocation2 + $0x8] sm:$0xc0] %vm433_vm10, %v758_v37 }
 0xbca   :  { %761 = vst.msk [vmem:[#allocation2 - $0x6] sm:$0xc0] %vm435_vm11, %v758_v37 }
 0xbd0   :  { %v763_v47 = vld [vmem:[#allocation2 + $0x8] sm:$0xff] }
 0xbd1   :  { %992 = vtanh.f32 %v763_v47  ;;  %v762_v48 = vld [vmem:[#allocation2] sm:$0xff] }
 0xbd2   :  { %994 = vtanh.f32 %v762_v48 }
 0xbd7   :  { %v993_v49 = vpop.eup %992 }
 0xbd8   :  { %917 = vmatpush.xpose.msk.msra.mxu1 %vm191_vm4, %v993_v49  ;;  %v995_v50 = vpop.eup %994 }
 0xbdc   :  { %918 = vmatpush.xpose.msk.msra.mxu1 %vm191_vm4, %v995_v50 }
 0xbdf   :  { %919 = vmatmul.msk.f32.vlgmr.msra.gmra.mxu1 %vm191_vm4, %v766_v51 }
 0xbe0   :  { %838 = vmatpush.msrb.mxu1 %v993_v49 }
 0xbe2   :  { %839 = vmatpush.msrb.mxu1 %v995_v50 }
 0xc5c   :  { %v793_v61 = vpop.f32.mrf.mxu1 }
 0xc5d   :  { %v797_v52 = vsel %vm796_vm12, %v793_v61, -inf }
 0xc5e   :  { %798 = vmax.xlane.f32.xlu1 %v797_v52 }
 0xcd1   :  { %v799_v53 = vpop.xlane.xlu1 %798 }
 0xcd2   :  { %v800_v54 = vsub.f32 %v793_v61, %v799_v53 }
 0xcd4   :  { %v801_v55 = vmul.f32 1.442695, %v800_v54 }
 0xcd6   :  { %996 = vpow2.f32 %v801_v55 }
 0xcdc   :  { %v997_v56 = vpop.eup %996 }
 0xcdd   :  { %v803_v57 = vsel %vm796_vm12, %v997_v56, 0.0 }
 0xcde   :  { %804 = vadd.xlane.f32.xlu2 %v803_v57 }
 0xd51   :  { %v805_v63 = vpop.xlane.xlu2 %804 }
 0xd52   :  { %998 = vrcp.f32 %v805_v63  ;;  %v817_v14 = vand.u32 2147483648, %v805_v63  ;;  %v815_v16 = vand.u32 2147483647, %v805_v63  ;;  %vm811_vm14 = vweird.f32 %v805_v63 }
 0xd54   :  { %v818_v18 = vor.u32 1.1754944e-38, %v817_v14  ;;  %vm816_vm1 = vcmp.eq.f32.partialorder %v815_v16, 8.507059e+37 }
 0xd58   :  { %v999_v12 = vpop.eup %998 }
 0xd59   :  { %v807_v36 = vmul.f32 %v999_v12, %v805_v63  ;;  %vm812_vm13 = vweird.f32 %v999_v12 }
 0xd5a   :  { %vm813_vm15 = vmor %vm811_vm14, %vm812_vm13 }
 0xd5b   :  { %v808_v13 = vsub.f32 1.0, %v807_v36 }
 0xd5d   :  { %v809_v15 = vmul.f32 %v999_v12, %v808_v13 }
 0xd5f   :  { %v810_v17 = vadd.f32 %v999_v12, %v809_v15 }
 0xd61   :  { %v814_v19 = vsel %vm813_vm15, %v999_v12, %v810_v17 }
 0xd62   :  { %v819_v30 = vsel %vm816_vm1, %v818_v18, %v814_v19 }
 0xd63   :  { %v820_v20 = vmul.f32 %v997_v56, %v819_v30 }
 0xd65   :  { %920 = vmatmul.msk.f32.vlgmr.msrb.gmra.mxu1 %vm55_vm0, %v820_v20  ;;  %vm880_vm0 = vcmask 9216  }
 0xde2   :  { %v841_v24 = vpop.f32.mrf.mxu1 }
 0xde3   :  { %1000 = vtanh.f32 %v841_v24 }
 0xde9   :  { %v1001_v25 = vpop.eup %1000 }
 0xdea   :  { %921 = vmatmul.msk.f32.vlgmr.msra.gmra.mxu0 %vm191_vm4, %v1001_v25 }
 0xe67   :  { %v877_v27 = vpop.f32.mrf.mxu0 }
 0xe68   :  { %v878_v28 = vadd.f32 %v927_v26, %v877_v27 }
 0xe6a   :  { %881 = vst.msk [vmem:[#allocation6] sm:$0x3] %vm880_vm0, %v878_v28 }
 0xe6b   :  { %892 = dma.vmem_to_hbm [thread:$0]  %s888_s15, 32, %s890_s18, [#allocation5]  }
 0xe6c   :  { %1052 = dma.done.wait [#allocation5], 32  }
 0xe6d   :  { %1053 = vsyncadd [#allocation5], 4294967264 }
 0xe6e   :  { %897 = vsyncpa [#allocation4], 1 }
 0xe6f   :  { %898 = vsyncpa [#allocation5], 1 }

</bundles_post_ra>
